<compile_context>
chip_gen: v7x
topology: tpu7x:2x2x1
jax: 0.10.0
libtpu: 0.0.40
codegen_flags: <defaults>
</compile_context>

<pallas_src>
import math
from collections import namedtuple

import numpy as np

import jax
import jax.numpy as jnp
from jax import lax
from jax.experimental import pallas as pl
from jax.experimental.pallas import tpu as pltpu


# ---------------------------------------------------------------------------
# channel split logic (identical to the PyTorch module)
# ---------------------------------------------------------------------------
def _get_split_sizes(channels, num_kernels, p):
    sizes = []
    for i in range(1, num_kernels + 1):
        progress = min(float(i) / num_kernels, 1)
        remaining_progress = (1.0 - progress) ** p
        sizes.append(int(channels - channels * remaining_progress) - int(np.sum(sizes)))
    sizes[0] += channels - int(np.sum(sizes))
    return sizes


_Group = namedtuple(
    "_Group",
    ["k", "cin", "cout", "pad_w", "pad_h", "cin_start", "cout_start", "kstart"])


def _round_up(x, m):
    return ((x + m - 1) // m) * m


# ---------------------------------------------------------------------------
# Fused kernel: im2col of every group into one stacked column matrix, then a
# single block-diagonal MXU matmul + bias + one lane/sublane-aligned store.
# ---------------------------------------------------------------------------
def _make_mixed_conv_kernel(conv_groups, Nb, Wbuf, PH, PW, L_pad):
    def kernel(x_ref, w_ref, b_ref, o_ref, col_ref):
        # ---- im2col: each (group, kh, kw) tap is ONE contiguous copy whose
        #      destination starts at a multiple of 128 and is L_pad wide.
        for b in range(Nb):
            c0 = b * L_pad
            for g in conv_groups:
                ph_lo = g.pad_h // 2
                pw_lo = g.pad_w // 2
                for kh in range(g.k):
                    for kw in range(g.k):
                        t0 = (kh + PH - ph_lo) * Wbuf + (kw + PW - pw_lo)
                        row = g.kstart + (kh * g.k + kw) * g.cin
                        col_ref[row:row + g.cin, c0:c0 + L_pad] = x_ref[
                            b, g.cin_start:g.cin_start + g.cin, t0:t0 + L_pad]

        # ---- one fused matmul for all groups / all batch elements ---------
        acc = jnp.dot(w_ref[...], col_ref[...],
                      preferred_element_type=jnp.float32)
        acc = acc + b_ref[...]          # f32 bias add (bias-only groups too)

        for b in range(Nb):
            o_ref[b, :, :] = acc[:, b * L_pad:(b + 1) * L_pad].astype(o_ref.dtype)

    return kernel


# ---------------------------------------------------------------------------
# Conv2dMixedSizeStatic forward (JAX/Pallas)
# ---------------------------------------------------------------------------
class Conv2dMixedSizeStaticPallas:
    """JAX/Pallas forward-pass equivalent of Conv2dMixedSizeStatic (NCHW)."""

    def __init__(self, in_channels, out_channels, kernel_sizes, p, pads, key,
                 compute_dtype=jnp.bfloat16):
        self.p = p
        self.compute_dtype = compute_dtype
        num_kernels = len(kernel_sizes)
        self.in_channels = _get_split_sizes(in_channels, num_kernels, p)
        self.out_channels = _get_split_sizes(out_channels, num_kernels, p)
        self.kernel_sizes = list(kernel_sizes)
        self.pads = list(pads)

        groups = []
        self.w_oihw = []      # per group: (cout, cin, k, k) f32 or None
        self.bias_vec = []    # per group: (cout,) f32 or None

        cin_start = cout_start = kstart = 0
        for i, k in enumerate(kernel_sizes):
            cin, cout = self.in_channels[i], self.out_channels[i]
            pad_w, pad_h = pads[i]
            is_conv = (cin > 0 and cout > 0)
            groups.append(_Group(k, cin, cout, pad_w, pad_h,
                                 cin_start, cout_start,
                                 kstart if is_conv else -1))
            cin_start += cin
            cout_start += cout
            if is_conv:
                kstart += k * k * cin

            if cout > 0:
                key, kw_key, kb_key = jax.random.split(key, 3)
                fan_in = max(cin * k * k, 1)
                bound = 1.0 / math.sqrt(fan_in)
                self.bias_vec.append(
                    jax.random.uniform(kb_key, (cout,), jnp.float32, -bound, bound))
                if cin > 0:
                    self.w_oihw.append(
                        jax.random.uniform(kw_key, (cout, cin, k, k),
                                           jnp.float32, -bound, bound))
                else:
                    self.w_oihw.append(None)
            else:
                self.w_oihw.append(None)
                self.bias_vec.append(None)

        self.groups = groups
        self.Cin_total = sum(self.in_channels)
        self.Cout_total = sum(self.out_channels)
        self.Ktot = kstart
        self.Cout_pad = max(_round_up(max(self.Cout_total, 1), 8), 8)

        # ---- fused block-diagonal weight + fused bias ----------------------
        # col rows of group g are ordered (kh, kw, cin); w_mat must match.
        w_big = np.zeros((self.Cout_pad, max(self.Ktot, 1)), np.float32)
        b_big = np.zeros((self.Cout_pad, 1), np.float32)
        for i, g in enumerate(groups):
            if g.cout == 0:
                continue
            b_big[g.cout_start:g.cout_start + g.cout, 0] = np.asarray(self.bias_vec[i])
            if g.cin > 0:
                w = np.asarray(self.w_oihw[i])                       # OIHW
                w_mat = np.transpose(w, (0, 2, 3, 1)).reshape(g.cout, g.k * g.k * g.cin)
                w_big[g.cout_start:g.cout_start + g.cout,
                      g.kstart:g.kstart + g.k * g.k * g.cin] = w_mat
        self.w_big = jnp.asarray(w_big, compute_dtype)
        self.b_big = jnp.asarray(b_big, jnp.float32)

    # -----------------------------------------------------------------------
    def __call__(self, x_nchw):
        N, Cin_total, H, W = x_nchw.shape
        assert Cin_total == self.Cin_total
        Cout_total = self.Cout_total

        active = [g for g in self.groups if g.cout > 0]
        if not active:
            raise ValueError("all output channel groups are empty")
        spatial = {(H + g.pad_h - g.k + 1, W + g.pad_w - g.k + 1) for g in active}
        if len(spatial) != 1:
            raise ValueError(f"groups produce different spatial sizes: {spatial}")
        Ho, Wo = spatial.pop()
        assert Ho >= 1 and Wo >= 1

        conv_groups = [g for g in self.groups if g.cout > 0 and g.cin > 0]
        if not conv_groups:           # degenerate bias-only module
            return jnp.broadcast_to(
                self.b_big[:Cout_total].reshape(1, Cout_total, 1, 1)
                    .astype(x_nchw.dtype),
                (N, Cout_total, Ho, Wo))

        # shared zero-padded frame: image placed at (PH, PW); each group's tap
        # offsets just shift inside it, so ONE wrapper-side pad serves all.
        PH = max(g.pad_h // 2 for g in conv_groups)
        PW = max(g.pad_w // 2 for g in conv_groups)
        ph_hi = max(g.pad_h - g.pad_h // 2 for g in conv_groups)
        pw_hi = max(g.pad_w - g.pad_w // 2 for g in conv_groups)
        Hbuf = PH + H + ph_hi
        Wbuf = PW + W + pw_hi

        L = Ho * Wbuf                        # flat (row-strided) output length
        L_pad = _round_up(L, 128)            # lane-aligned matmul-N / store dim

        # max tap start -> size the flattened input so L_pad-wide reads stay
        # in-bounds (VMEM reads have no runtime bounds check).
        max_t0 = max((g.k - 1 + PH - g.pad_h // 2) * Wbuf
                     + (g.k - 1 + PW - g.pad_w // 2) for g in conv_groups)
        S_pad = _round_up(max(Hbuf * Wbuf, max_t0 + L_pad), 128)
        assert max_t0 + L_pad <= S_pad

        # grid / batch folding: keep 2 "parallel" steps when possible (v7x has
        # two TensorCores); within a step all Nb images share one big matmul.
        G = 2 if (N >= 2 and N % 2 == 0) else 1
        Nb = N // G

        # wrapper-side zero pad (single XLA pad pass) + flatten + bf16 cast
        x_pad = jnp.pad(x_nchw, ((0, 0), (0, 0), (PH, ph_hi), (PW, pw_hi)))
        x_flat = x_pad.reshape(N, Cin_total, Hbuf * Wbuf)
        x_flat = jnp.pad(x_flat, ((0, 0), (0, 0), (0, S_pad - Hbuf * Wbuf)))
        x_flat = x_flat.astype(self.compute_dtype)

        kernel = _make_mixed_conv_kernel(conv_groups, Nb, Wbuf, PH, PW, L_pad)

        # explicit VMEM budget (2x for double-buffered blocks) per the review
        itemsize = jnp.dtype(self.compute_dtype).itemsize
        x_block_b = Nb * Cin_total * S_pad * itemsize
        o_block_b = Nb * self.Cout_pad * L_pad * 4
        w_b = self.Cout_pad * max(self.Ktot, 1) * itemsize + self.Cout_pad * 4
        col_b = max(self.Ktot, 1) * Nb * L_pad * itemsize
        needed = 2 * (x_block_b + o_block_b + w_b) + col_b
        vmem_limit = int(min(max(2 * needed + (2 << 20), 16 << 20), 60 << 20))

        out_flat = pl.pallas_call(
            kernel,
            out_shape=jax.ShapeDtypeStruct((N, self.Cout_pad, L_pad), jnp.float32),
            grid_spec=pltpu.PrefetchScalarGridSpec(
                num_scalar_prefetch=0,
                grid=(G,),
                in_specs=[
                    pl.BlockSpec((Nb, Cin_total, S_pad), lambda n: (n, 0, 0)),
                    pl.BlockSpec(self.w_big.shape, lambda n: (0, 0)),
                    pl.BlockSpec(self.b_big.shape, lambda n: (0, 0)),
                ],
                out_specs=pl.BlockSpec((Nb, self.Cout_pad, L_pad),
                                       lambda n: (n, 0, 0)),
                scratch_shapes=[
                    pltpu.VMEM((self.Ktot, Nb * L_pad), self.compute_dtype)]),
            compiler_params=pltpu.CompilerParams(
                dimension_semantics=("parallel",),
                vmem_limit_bytes=vmem_limit),
        )(x_flat, self.w_big, self.b_big)

        # TODO(synk): fuse this strided view into the consumer to avoid an
        # extra HBM pass over the (small) output.
        out = out_flat[:, :Cout_total, :Ho * Wbuf]
        out = out.reshape(N, Cout_total, Ho, Wbuf)[:, :, :, :Wo]
        return out.astype(x_nchw.dtype)

    # -----------------------------------------------------------------------
    # pure-JAX reference (XLA conv).  quantize=True mirrors the kernel's bf16
    # operands (f32 accumulation), so the comparison tolerance can stay tight.
    def reference(self, x_nchw, quantize=True):
        N, _, H, W = x_nchw.shape
        cd = self.compute_dtype
        outs = []
        for i, g in enumerate(self.groups):
            if g.cout == 0:
                continue
            Ho = H + g.pad_h - g.k + 1
            Wo = W + g.pad_w - g.k + 1
            bias = self.bias_vec[i].reshape(1, g.cout, 1, 1)
            if g.cin > 0:
                chunk = x_nchw[:, g.cin_start:g.cin_start + g.cin]
                w = self.w_oihw[i]
                if quantize:
                    chunk = chunk.astype(cd).astype(jnp.float32)
                    w = w.astype(cd).astype(jnp.float32)
                o = lax.conv_general_dilated(
                    chunk, w, window_strides=(1, 1),
                    padding=((g.pad_h // 2, g.pad_h - g.pad_h // 2),
                             (g.pad_w // 2, g.pad_w - g.pad_w // 2)),
                    dimension_numbers=("NCHW", "OIHW", "NCHW"),
                    precision=lax.Precision.HIGHEST)
                o = o + bias
            else:
                o = jnp.broadcast_to(bias, (N, g.cout, Ho, Wo))
            outs.append(o)
        return jnp.concatenate(outs, axis=1)


if __name__ == "__main__":
    key = jax.random.PRNGKey(0)
    key, x_key, p_key = jax.random.split(key, 3)

    # small, module-consistent shapes
    N, Cin, H, W = 2, 4, 16, 16
    Cout = 8
    kernel_sizes = [3, 5]
    p = 2.0
    pads = [(2, 2), (4, 4)]   # (pad_w, pad_h) = k - 1 -> "same" spatial size

    x = jax.random.normal(x_key, (N, Cin, H, W), jnp.float32)

    module = Conv2dMixedSizeStaticPallas(Cin, Cout, kernel_sizes, p, pads, p_key)

    out = jax.block_until_ready(module(x))
    ref_q = jax.block_until_ready(module.reference(x, quantize=True))

    assert out.shape == (N, Cout, H, W), out.shape

    # tight check against the bf16-quantized reference (same operand precision)
    max_err = float(jnp.max(jnp.abs(out - ref_q)))
    assert jnp.allclose(out, ref_q, atol=1e-3, rtol=1e-3), max_err

    # loose sanity check against the full-f32 reference (bf16 operand error)
    ref_f32 = jax.block_until_ready(module.reference(x, quantize=False))
    assert jnp.allclose(out, ref_f32, atol=5e-2, rtol=5e-2), float(
        jnp.max(jnp.abs(out - ref_f32)))

    print("KERNEL_OK")
</pallas_src>

<mosaic_0001>
module attributes {stable_mosaic.version = 11 : i64} {
  func.func @kernel(%arg0: i32, %arg1: memref<1x4x512xbf16, #tpu.memory_space<vmem>>, %arg2: memref<8x52xbf16, #tpu.memory_space<vmem>>, %arg3: memref<8x1xf32, #tpu.memory_space<vmem>>, %arg4: memref<1x8x384xf32, #tpu.memory_space<vmem>>, %arg5: memref<52x384xbf16, #tpu.memory_space<vmem>>) attributes {dimension_semantics = [#tpu.dimension_semantics<parallel>], iteration_bounds = array<i64: 2>, scalar_prefetch = 0 : i64, scratch_operands = 1 : i64, tpu.core_type = #tpu.core_type<tc>, window_params = [{transform_indices = @transform_0, window_bounds = array<i64: 1, 4, 512>}, {pipeline_mode = #tpu.pipeline_mode<synchronous>, transform_indices = @transform_1, window_bounds = array<i64: 8, 52>}, {pipeline_mode = #tpu.pipeline_mode<synchronous>, transform_indices = @transform_2, window_bounds = array<i64: 8, 1>}, {transform_indices = @transform_3, window_bounds = array<i64: 1, 8, 384>}]} {
    %c0 = arith.constant 0 : index
    %c0_0 = arith.constant 0 : index
    %c21 = arith.constant 21 : index
    %0 = vector.load %arg1[%c0, %c0_0, %c21] : memref<1x4x512xbf16, #tpu.memory_space<vmem>>, vector<1x3x384xbf16>
    %1 = vector.shape_cast %0 : vector<1x3x384xbf16> to vector<3x384xbf16>
    %c0_1 = arith.constant 0 : index
    %c0_2 = arith.constant 0 : index
    %2 = vector.load %arg5[%c0_1, %c0_2] : memref<52x384xbf16, #tpu.memory_space<vmem>>, vector<3x384xbf16>
    tpu.vector_store %arg5[%c0_1, %c0_2], %1 {strides = array<i32>} : memref<52x384xbf16, #tpu.memory_space<vmem>>, vector<3x384xbf16>,
    %c0_3 = arith.constant 0 : index
    %c0_4 = arith.constant 0 : index
    %c22 = arith.constant 22 : index
    %3 = vector.load %arg1[%c0_3, %c0_4, %c22] : memref<1x4x512xbf16, #tpu.memory_space<vmem>>, vector<1x3x384xbf16>
    %4 = vector.shape_cast %3 : vector<1x3x384xbf16> to vector<3x384xbf16>
    %c3 = arith.constant 3 : index
    %c0_5 = arith.constant 0 : index
    %5 = vector.load %arg5[%c3, %c0_5] : memref<52x384xbf16, #tpu.memory_space<vmem>>, vector<3x384xbf16>
    tpu.vector_store %arg5[%c3, %c0_5], %4 {strides = array<i32>} : memref<52x384xbf16, #tpu.memory_space<vmem>>, vector<3x384xbf16>,
    %c0_6 = arith.constant 0 : index
    %c0_7 = arith.constant 0 : index
    %c23 = arith.constant 23 : index
    %6 = vector.load %arg1[%c0_6, %c0_7, %c23] : memref<1x4x512xbf16, #tpu.memory_space<vmem>>, vector<1x3x384xbf16>
    %7 = vector.shape_cast %6 : vector<1x3x384xbf16> to vector<3x384xbf16>
    %c6 = arith.constant 6 : index
    %c0_8 = arith.constant 0 : index
    %8 = vector.load %arg5[%c6, %c0_8] : memref<52x384xbf16, #tpu.memory_space<vmem>>, vector<3x384xbf16>
    tpu.vector_store %arg5[%c6, %c0_8], %7 {strides = array<i32>} : memref<52x384xbf16, #tpu.memory_space<vmem>>, vector<3x384xbf16>,
    %c0_9 = arith.constant 0 : index
    %c0_10 = arith.constant 0 : index
    %c41 = arith.constant 41 : index
    %9 = vector.load %arg1[%c0_9, %c0_10, %c41] : memref<1x4x512xbf16, #tpu.memory_space<vmem>>, vector<1x3x384xbf16>
    %10 = vector.shape_cast %9 : vector<1x3x384xbf16> to vector<3x384xbf16>
    %c9 = arith.constant 9 : index
    %c0_11 = arith.constant 0 : index
    %11 = vector.load %arg5[%c9, %c0_11] : memref<52x384xbf16, #tpu.memory_space<vmem>>, vector<3x384xbf16>
    tpu.vector_store %arg5[%c9, %c0_11], %10 {strides = array<i32>} : memref<52x384xbf16, #tpu.memory_space<vmem>>, vector<3x384xbf16>,
    %c0_12 = arith.constant 0 : index
    %c0_13 = arith.constant 0 : index
    %c42 = arith.constant 42 : index
    %12 = vector.load %arg1[%c0_12, %c0_13, %c42] : memref<1x4x512xbf16, #tpu.memory_space<vmem>>, vector<1x3x384xbf16>
    %13 = vector.shape_cast %12 : vector<1x3x384xbf16> to vector<3x384xbf16>
    %c12 = arith.constant 12 : index
    %c0_14 = arith.constant 0 : index
    %14 = vector.load %arg5[%c12, %c0_14] : memref<52x384xbf16, #tpu.memory_space<vmem>>, vector<3x384xbf16>
    tpu.vector_store %arg5[%c12, %c0_14], %13 {strides = array<i32>} : memref<52x384xbf16, #tpu.memory_space<vmem>>, vector<3x384xbf16>,
    %c0_15 = arith.constant 0 : index
    %c0_16 = arith.constant 0 : index
    %c43 = arith.constant 43 : index
    %15 = vector.load %arg1[%c0_15, %c0_16, %c43] : memref<1x4x512xbf16, #tpu.memory_space<vmem>>, vector<1x3x384xbf16>
    %16 = vector.shape_cast %15 : vector<1x3x384xbf16> to vector<3x384xbf16>
    %c15 = arith.constant 15 : index
    %c0_17 = arith.constant 0 : index
    %17 = vector.load %arg5[%c15, %c0_17] : memref<52x384xbf16, #tpu.memory_space<vmem>>, vector<3x384xbf16>
    tpu.vector_store %arg5[%c15, %c0_17], %16 {strides = array<i32>} : memref<52x384xbf16, #tpu.memory_space<vmem>>, vector<3x384xbf16>,
    %c0_18 = arith.constant 0 : index
    %c0_19 = arith.constant 0 : index
    %c61 = arith.constant 61 : index
    %18 = vector.load %arg1[%c0_18, %c0_19, %c61] : memref<1x4x512xbf16, #tpu.memory_space<vmem>>, vector<1x3x384xbf16>
    %19 = vector.shape_cast %18 : vector<1x3x384xbf16> to vector<3x384xbf16>
    %c18 = arith.constant 18 : index
    %c0_20 = arith.constant 0 : index
    %20 = vector.load %arg5[%c18, %c0_20] : memref<52x384xbf16, #tpu.memory_space<vmem>>, vector<3x384xbf16>
    tpu.vector_store %arg5[%c18, %c0_20], %19 {strides = array<i32>} : memref<52x384xbf16, #tpu.memory_space<vmem>>, vector<3x384xbf16>,
    %c0_21 = arith.constant 0 : index
    %c0_22 = arith.constant 0 : index
    %c62 = arith.constant 62 : index
    %21 = vector.load %arg1[%c0_21, %c0_22, %c62] : memref<1x4x512xbf16, #tpu.memory_space<vmem>>, vector<1x3x384xbf16>
    %22 = vector.shape_cast %21 : vector<1x3x384xbf16> to vector<3x384xbf16>
    %c21_23 = arith.constant 21 : index
    %c0_24 = arith.constant 0 : index
    %23 = vector.load %arg5[%c21_23, %c0_24] : memref<52x384xbf16, #tpu.memory_space<vmem>>, vector<3x384xbf16>
    tpu.vector_store %arg5[%c21_23, %c0_24], %22 {strides = array<i32>} : memref<52x384xbf16, #tpu.memory_space<vmem>>, vector<3x384xbf16>,
    %c0_25 = arith.constant 0 : index
    %c0_26 = arith.constant 0 : index
    %c63 = arith.constant 63 : index
    %24 = vector.load %arg1[%c0_25, %c0_26, %c63] : memref<1x4x512xbf16, #tpu.memory_space<vmem>>, vector<1x3x384xbf16>
    %25 = vector.shape_cast %24 : vector<1x3x384xbf16> to vector<3x384xbf16>
    %c24 = arith.constant 24 : index
    %c0_27 = arith.constant 0 : index
    %26 = vector.load %arg5[%c24, %c0_27] : memref<52x384xbf16, #tpu.memory_space<vmem>>, vector<3x384xbf16>
    tpu.vector_store %arg5[%c24, %c0_27], %25 {strides = array<i32>} : memref<52x384xbf16, #tpu.memory_space<vmem>>, vector<3x384xbf16>,
    %c0_28 = arith.constant 0 : index
    %c3_29 = arith.constant 3 : index
    %c0_30 = arith.constant 0 : index
    %27 = vector.load %arg1[%c0_28, %c3_29, %c0_30] : memref<1x4x512xbf16, #tpu.memory_space<vmem>>, vector<1x1x384xbf16>
    %28 = vector.shape_cast %27 : vector<1x1x384xbf16> to vector<1x384xbf16>
    %c27 = arith.constant 27 : index
    %c0_31 = arith.constant 0 : index
    %29 = vector.load %arg5[%c27, %c0_31] : memref<52x384xbf16, #tpu.memory_space<vmem>>, vector<1x384xbf16>
    tpu.vector_store %arg5[%c27, %c0_31], %28 {strides = array<i32>} : memref<52x384xbf16, #tpu.memory_space<vmem>>, vector<1x384xbf16>,
    %c0_32 = arith.constant 0 : index
    %c3_33 = arith.constant 3 : index
    %c1 = arith.constant 1 : index
    %30 = vector.load %arg1[%c0_32, %c3_33, %c1] : memref<1x4x512xbf16, #tpu.memory_space<vmem>>, vector<1x1x384xbf16>
    %31 = vector.shape_cast %30 : vector<1x1x384xbf16> to vector<1x384xbf16>
    %c28 = arith.constant 28 : index
    %c0_34 = arith.constant 0 : index
    %32 = vector.load %arg5[%c28, %c0_34] : memref<52x384xbf16, #tpu.memory_space<vmem>>, vector<1x384xbf16>
    tpu.vector_store %arg5[%c28, %c0_34], %31 {strides = array<i32>} : memref<52x384xbf16, #tpu.memory_space<vmem>>, vector<1x384xbf16>,
    %c0_35 = arith.constant 0 : index
    %c3_36 = arith.constant 3 : index
    %c2 = arith.constant 2 : index
    %33 = vector.load %arg1[%c0_35, %c3_36, %c2] : memref<1x4x512xbf16, #tpu.memory_space<vmem>>, vector<1x1x384xbf16>
    %34 = vector.shape_cast %33 : vector<1x1x384xbf16> to vector<1x384xbf16>
    %c29 = arith.constant 29 : index
    %c0_37 = arith.constant 0 : index
    %35 = vector.load %arg5[%c29, %c0_37] : memref<52x384xbf16, #tpu.memory_space<vmem>>, vector<1x384xbf16>
    tpu.vector_store %arg5[%c29, %c0_37], %34 {strides = array<i32>} : memref<52x384xbf16, #tpu.memory_space<vmem>>, vector<1x384xbf16>,
    %c0_38 = arith.constant 0 : index
    %c3_39 = arith.constant 3 : index
    %c3_40 = arith.constant 3 : index
    %36 = vector.load %arg1[%c0_38, %c3_39, %c3_40] : memref<1x4x512xbf16, #tpu.memory_space<vmem>>, vector<1x1x384xbf16>
    %37 = vector.shape_cast %36 : vector<1x1x384xbf16> to vector<1x384xbf16>
    %c30 = arith.constant 30 : index
    %c0_41 = arith.constant 0 : index
    %38 = vector.load %arg5[%c30, %c0_41] : memref<52x384xbf16, #tpu.memory_space<vmem>>, vector<1x384xbf16>
    tpu.vector_store %arg5[%c30, %c0_41], %37 {strides = array<i32>} : memref<52x384xbf16, #tpu.memory_space<vmem>>, vector<1x384xbf16>,
    %c0_42 = arith.constant 0 : index
    %c3_43 = arith.constant 3 : index
    %c4 = arith.constant 4 : index
    %39 = vector.load %arg1[%c0_42, %c3_43, %c4] : memref<1x4x512xbf16, #tpu.memory_space<vmem>>, vector<1x1x384xbf16>
    %40 = vector.shape_cast %39 : vector<1x1x384xbf16> to vector<1x384xbf16>
    %c31 = arith.constant 31 : index
    %c0_44 = arith.constant 0 : index
    %41 = vector.load %arg5[%c31, %c0_44] : memref<52x384xbf16, #tpu.memory_space<vmem>>, vector<1x384xbf16>
    tpu.vector_store %arg5[%c31, %c0_44], %40 {strides = array<i32>} : memref<52x384xbf16, #tpu.memory_space<vmem>>, vector<1x384xbf16>,
    %c0_45 = arith.constant 0 : index
    %c3_46 = arith.constant 3 : index
    %c20 = arith.constant 20 : index
    %42 = vector.load %arg1[%c0_45, %c3_46, %c20] : memref<1x4x512xbf16, #tpu.memory_space<vmem>>, vector<1x1x384xbf16>
    %43 = vector.shape_cast %42 : vector<1x1x384xbf16> to vector<1x384xbf16>
    %c32 = arith.constant 32 : index
    %c0_47 = arith.constant 0 : index
    %44 = vector.load %arg5[%c32, %c0_47] : memref<52x384xbf16, #tpu.memory_space<vmem>>, vector<1x384xbf16>
    tpu.vector_store %arg5[%c32, %c0_47], %43 {strides = array<i32>} : memref<52x384xbf16, #tpu.memory_space<vmem>>, vector<1x384xbf16>,
    %c0_48 = arith.constant 0 : index
    %c3_49 = arith.constant 3 : index
    %c21_50 = arith.constant 21 : index
    %45 = vector.load %arg1[%c0_48, %c3_49, %c21_50] : memref<1x4x512xbf16, #tpu.memory_space<vmem>>, vector<1x1x384xbf16>
    %46 = vector.shape_cast %45 : vector<1x1x384xbf16> to vector<1x384xbf16>
    %c33 = arith.constant 33 : index
    %c0_51 = arith.constant 0 : index
    %47 = vector.load %arg5[%c33, %c0_51] : memref<52x384xbf16, #tpu.memory_space<vmem>>, vector<1x384xbf16>
    tpu.vector_store %arg5[%c33, %c0_51], %46 {strides = array<i32>} : memref<52x384xbf16, #tpu.memory_space<vmem>>, vector<1x384xbf16>,
    %c0_52 = arith.constant 0 : index
    %c3_53 = arith.constant 3 : index
    %c22_54 = arith.constant 22 : index
    %48 = vector.load %arg1[%c0_52, %c3_53, %c22_54] : memref<1x4x512xbf16, #tpu.memory_space<vmem>>, vector<1x1x384xbf16>
    %49 = vector.shape_cast %48 : vector<1x1x384xbf16> to vector<1x384xbf16>
    %c34 = arith.constant 34 : index
    %c0_55 = arith.constant 0 : index
    %50 = vector.load %arg5[%c34, %c0_55] : memref<52x384xbf16, #tpu.memory_space<vmem>>, vector<1x384xbf16>
    tpu.vector_store %arg5[%c34, %c0_55], %49 {strides = array<i32>} : memref<52x384xbf16, #tpu.memory_space<vmem>>, vector<1x384xbf16>,
    %c0_56 = arith.constant 0 : index
    %c3_57 = arith.constant 3 : index
    %c23_58 = arith.constant 23 : index
    %51 = vector.load %arg1[%c0_56, %c3_57, %c23_58] : memref<1x4x512xbf16, #tpu.memory_space<vmem>>, vector<1x1x384xbf16>
    %52 = vector.shape_cast %51 : vector<1x1x384xbf16> to vector<1x384xbf16>
    %c35 = arith.constant 35 : index
    %c0_59 = arith.constant 0 : index
    %53 = vector.load %arg5[%c35, %c0_59] : memref<52x384xbf16, #tpu.memory_space<vmem>>, vector<1x384xbf16>
    tpu.vector_store %arg5[%c35, %c0_59], %52 {strides = array<i32>} : memref<52x384xbf16, #tpu.memory_space<vmem>>, vector<1x384xbf16>,
    %c0_60 = arith.constant 0 : index
    %c3_61 = arith.constant 3 : index
    %c24_62 = arith.constant 24 : index
    %54 = vector.load %arg1[%c0_60, %c3_61, %c24_62] : memref<1x4x512xbf16, #tpu.memory_space<vmem>>, vector<1x1x384xbf16>
    %55 = vector.shape_cast %54 : vector<1x1x384xbf16> to vector<1x384xbf16>
    %c36 = arith.constant 36 : index
    %c0_63 = arith.constant 0 : index
    %56 = vector.load %arg5[%c36, %c0_63] : memref<52x384xbf16, #tpu.memory_space<vmem>>, vector<1x384xbf16>
    tpu.vector_store %arg5[%c36, %c0_63], %55 {strides = array<i32>} : memref<52x384xbf16, #tpu.memory_space<vmem>>, vector<1x384xbf16>,
    %c0_64 = arith.constant 0 : index
    %c3_65 = arith.constant 3 : index
    %c40 = arith.constant 40 : index
    %57 = vector.load %arg1[%c0_64, %c3_65, %c40] : memref<1x4x512xbf16, #tpu.memory_space<vmem>>, vector<1x1x384xbf16>
    %58 = vector.shape_cast %57 : vector<1x1x384xbf16> to vector<1x384xbf16>
    %c37 = arith.constant 37 : index
    %c0_66 = arith.constant 0 : index
    %59 = vector.load %arg5[%c37, %c0_66] : memref<52x384xbf16, #tpu.memory_space<vmem>>, vector<1x384xbf16>
    tpu.vector_store %arg5[%c37, %c0_66], %58 {strides = array<i32>} : memref<52x384xbf16, #tpu.memory_space<vmem>>, vector<1x384xbf16>,
    %c0_67 = arith.constant 0 : index
    %c3_68 = arith.constant 3 : index
    %c41_69 = arith.constant 41 : index
    %60 = vector.load %arg1[%c0_67, %c3_68, %c41_69] : memref<1x4x512xbf16, #tpu.memory_space<vmem>>, vector<1x1x384xbf16>
    %61 = vector.shape_cast %60 : vector<1x1x384xbf16> to vector<1x384xbf16>
    %c38 = arith.constant 38 : index
    %c0_70 = arith.constant 0 : index
    %62 = vector.load %arg5[%c38, %c0_70] : memref<52x384xbf16, #tpu.memory_space<vmem>>, vector<1x384xbf16>
    tpu.vector_store %arg5[%c38, %c0_70], %61 {strides = array<i32>} : memref<52x384xbf16, #tpu.memory_space<vmem>>, vector<1x384xbf16>,
    %c0_71 = arith.constant 0 : index
    %c3_72 = arith.constant 3 : index
    %c42_73 = arith.constant 42 : index
    %63 = vector.load %arg1[%c0_71, %c3_72, %c42_73] : memref<1x4x512xbf16, #tpu.memory_space<vmem>>, vector<1x1x384xbf16>
    %64 = vector.shape_cast %63 : vector<1x1x384xbf16> to vector<1x384xbf16>
    %c39 = arith.constant 39 : index
    %c0_74 = arith.constant 0 : index
    %65 = vector.load %arg5[%c39, %c0_74] : memref<52x384xbf16, #tpu.memory_space<vmem>>, vector<1x384xbf16>
    tpu.vector_store %arg5[%c39, %c0_74], %64 {strides = array<i32>} : memref<52x384xbf16, #tpu.memory_space<vmem>>, vector<1x384xbf16>,
    %c0_75 = arith.constant 0 : index
    %c3_76 = arith.constant 3 : index
    %c43_77 = arith.constant 43 : index
    %66 = vector.load %arg1[%c0_75, %c3_76, %c43_77] : memref<1x4x512xbf16, #tpu.memory_space<vmem>>, vector<1x1x384xbf16>
    %67 = vector.shape_cast %66 : vector<1x1x384xbf16> to vector<1x384xbf16>
    %c40_78 = arith.constant 40 : index
    %c0_79 = arith.constant 0 : index
    %68 = vector.load %arg5[%c40_78, %c0_79] : memref<52x384xbf16, #tpu.memory_space<vmem>>, vector<1x384xbf16>
    tpu.vector_store %arg5[%c40_78, %c0_79], %67 {strides = array<i32>} : memref<52x384xbf16, #tpu.memory_space<vmem>>, vector<1x384xbf16>,
    %c0_80 = arith.constant 0 : index
    %c3_81 = arith.constant 3 : index
    %c44 = arith.constant 44 : index
    %69 = vector.load %arg1[%c0_80, %c3_81, %c44] : memref<1x4x512xbf16, #tpu.memory_space<vmem>>, vector<1x1x384xbf16>
    %70 = vector.shape_cast %69 : vector<1x1x384xbf16> to vector<1x384xbf16>
    %c41_82 = arith.constant 41 : index
    %c0_83 = arith.constant 0 : index
    %71 = vector.load %arg5[%c41_82, %c0_83] : memref<52x384xbf16, #tpu.memory_space<vmem>>, vector<1x384xbf16>
    tpu.vector_store %arg5[%c41_82, %c0_83], %70 {strides = array<i32>} : memref<52x384xbf16, #tpu.memory_space<vmem>>, vector<1x384xbf16>,
    %c0_84 = arith.constant 0 : index
    %c3_85 = arith.constant 3 : index
    %c60 = arith.constant 60 : index
    %72 = vector.load %arg1[%c0_84, %c3_85, %c60] : memref<1x4x512xbf16, #tpu.memory_space<vmem>>, vector<1x1x384xbf16>
    %73 = vector.shape_cast %72 : vector<1x1x384xbf16> to vector<1x384xbf16>
    %c42_86 = arith.constant 42 : index
    %c0_87 = arith.constant 0 : index
    %74 = vector.load %arg5[%c42_86, %c0_87] : memref<52x384xbf16, #tpu.memory_space<vmem>>, vector<1x384xbf16>
    tpu.vector_store %arg5[%c42_86, %c0_87], %73 {strides = array<i32>} : memref<52x384xbf16, #tpu.memory_space<vmem>>, vector<1x384xbf16>,
    %c0_88 = arith.constant 0 : index
    %c3_89 = arith.constant 3 : index
    %c61_90 = arith.constant 61 : index
    %75 = vector.load %arg1[%c0_88, %c3_89, %c61_90] : memref<1x4x512xbf16, #tpu.memory_space<vmem>>, vector<1x1x384xbf16>
    %76 = vector.shape_cast %75 : vector<1x1x384xbf16> to vector<1x384xbf16>
    %c43_91 = arith.constant 43 : index
    %c0_92 = arith.constant 0 : index
    %77 = vector.load %arg5[%c43_91, %c0_92] : memref<52x384xbf16, #tpu.memory_space<vmem>>, vector<1x384xbf16>
    tpu.vector_store %arg5[%c43_91, %c0_92], %76 {strides = array<i32>} : memref<52x384xbf16, #tpu.memory_space<vmem>>, vector<1x384xbf16>,
    %c0_93 = arith.constant 0 : index
    %c3_94 = arith.constant 3 : index
    %c62_95 = arith.constant 62 : index
    %78 = vector.load %arg1[%c0_93, %c3_94, %c62_95] : memref<1x4x512xbf16, #tpu.memory_space<vmem>>, vector<1x1x384xbf16>
    %79 = vector.shape_cast %78 : vector<1x1x384xbf16> to vector<1x384xbf16>
    %c44_96 = arith.constant 44 : index
    %c0_97 = arith.constant 0 : index
    %80 = vector.load %arg5[%c44_96, %c0_97] : memref<52x384xbf16, #tpu.memory_space<vmem>>, vector<1x384xbf16>
    tpu.vector_store %arg5[%c44_96, %c0_97], %79 {strides = array<i32>} : memref<52x384xbf16, #tpu.memory_space<vmem>>, vector<1x384xbf16>,
    %c0_98 = arith.constant 0 : index
    %c3_99 = arith.constant 3 : index
    %c63_100 = arith.constant 63 : index
    %81 = vector.load %arg1[%c0_98, %c3_99, %c63_100] : memref<1x4x512xbf16, #tpu.memory_space<vmem>>, vector<1x1x384xbf16>
    %82 = vector.shape_cast %81 : vector<1x1x384xbf16> to vector<1x384xbf16>
    %c45 = arith.constant 45 : index
    %c0_101 = arith.constant 0 : index
    %83 = vector.load %arg5[%c45, %c0_101] : memref<52x384xbf16, #tpu.memory_space<vmem>>, vector<1x384xbf16>
    tpu.vector_store %arg5[%c45, %c0_101], %82 {strides = array<i32>} : memref<52x384xbf16, #tpu.memory_space<vmem>>, vector<1x384xbf16>,
    %c0_102 = arith.constant 0 : index
    %c3_103 = arith.constant 3 : index
    %c64 = arith.constant 64 : index
    %84 = vector.load %arg1[%c0_102, %c3_103, %c64] : memref<1x4x512xbf16, #tpu.memory_space<vmem>>, vector<1x1x384xbf16>
    %85 = vector.shape_cast %84 : vector<1x1x384xbf16> to vector<1x384xbf16>
    %c46 = arith.constant 46 : index
    %c0_104 = arith.constant 0 : index
    %86 = vector.load %arg5[%c46, %c0_104] : memref<52x384xbf16, #tpu.memory_space<vmem>>, vector<1x384xbf16>
    tpu.vector_store %arg5[%c46, %c0_104], %85 {strides = array<i32>} : memref<52x384xbf16, #tpu.memory_space<vmem>>, vector<1x384xbf16>,
    %c0_105 = arith.constant 0 : index
    %c3_106 = arith.constant 3 : index
    %c80 = arith.constant 80 : index
    %87 = vector.load %arg1[%c0_105, %c3_106, %c80] : memref<1x4x512xbf16, #tpu.memory_space<vmem>>, vector<1x1x384xbf16>
    %88 = vector.shape_cast %87 : vector<1x1x384xbf16> to vector<1x384xbf16>
    %c47 = arith.constant 47 : index
    %c0_107 = arith.constant 0 : index
    %89 = vector.load %arg5[%c47, %c0_107] : memref<52x384xbf16, #tpu.memory_space<vmem>>, vector<1x384xbf16>
    tpu.vector_store %arg5[%c47, %c0_107], %88 {strides = array<i32>} : memref<52x384xbf16, #tpu.memory_space<vmem>>, vector<1x384xbf16>,
    %c0_108 = arith.constant 0 : index
    %c3_109 = arith.constant 3 : index
    %c81 = arith.constant 81 : index
    %90 = vector.load %arg1[%c0_108, %c3_109, %c81] : memref<1x4x512xbf16, #tpu.memory_space<vmem>>, vector<1x1x384xbf16>
    %91 = vector.shape_cast %90 : vector<1x1x384xbf16> to vector<1x384xbf16>
    %c48 = arith.constant 48 : index
    %c0_110 = arith.constant 0 : index
    %92 = vector.load %arg5[%c48, %c0_110] : memref<52x384xbf16, #tpu.memory_space<vmem>>, vector<1x384xbf16>
    tpu.vector_store %arg5[%c48, %c0_110], %91 {strides = array<i32>} : memref<52x384xbf16, #tpu.memory_space<vmem>>, vector<1x384xbf16>,
    %c0_111 = arith.constant 0 : index
    %c3_112 = arith.constant 3 : index
    %c82 = arith.constant 82 : index
    %93 = vector.load %arg1[%c0_111, %c3_112, %c82] : memref<1x4x512xbf16, #tpu.memory_space<vmem>>, vector<1x1x384xbf16>
    %94 = vector.shape_cast %93 : vector<1x1x384xbf16> to vector<1x384xbf16>
    %c49 = arith.constant 49 : index
    %c0_113 = arith.constant 0 : index
    %95 = vector.load %arg5[%c49, %c0_113] : memref<52x384xbf16, #tpu.memory_space<vmem>>, vector<1x384xbf16>
    tpu.vector_store %arg5[%c49, %c0_113], %94 {strides = array<i32>} : memref<52x384xbf16, #tpu.memory_space<vmem>>, vector<1x384xbf16>,
    %c0_114 = arith.constant 0 : index
    %c3_115 = arith.constant 3 : index
    %c83 = arith.constant 83 : index
    %96 = vector.load %arg1[%c0_114, %c3_115, %c83] : memref<1x4x512xbf16, #tpu.memory_space<vmem>>, vector<1x1x384xbf16>
    %97 = vector.shape_cast %96 : vector<1x1x384xbf16> to vector<1x384xbf16>
    %c50 = arith.constant 50 : index
    %c0_116 = arith.constant 0 : index
    %98 = vector.load %arg5[%c50, %c0_116] : memref<52x384xbf16, #tpu.memory_space<vmem>>, vector<1x384xbf16>
    tpu.vector_store %arg5[%c50, %c0_116], %97 {strides = array<i32>} : memref<52x384xbf16, #tpu.memory_space<vmem>>, vector<1x384xbf16>,
    %c0_117 = arith.constant 0 : index
    %c3_118 = arith.constant 3 : index
    %c84 = arith.constant 84 : index
    %99 = vector.load %arg1[%c0_117, %c3_118, %c84] : memref<1x4x512xbf16, #tpu.memory_space<vmem>>, vector<1x1x384xbf16>
    %100 = vector.shape_cast %99 : vector<1x1x384xbf16> to vector<1x384xbf16>
    %c51 = arith.constant 51 : index
    %c0_119 = arith.constant 0 : index
    %101 = vector.load %arg5[%c51, %c0_119] : memref<52x384xbf16, #tpu.memory_space<vmem>>, vector<1x384xbf16>
    tpu.vector_store %arg5[%c51, %c0_119], %100 {strides = array<i32>} : memref<52x384xbf16, #tpu.memory_space<vmem>>, vector<1x384xbf16>,
    %c0_120 = arith.constant 0 : index
    %c0_121 = arith.constant 0 : index
    %102 = vector.load %arg2[%c0_120, %c0_121] : memref<8x52xbf16, #tpu.memory_space<vmem>>, vector<8x52xbf16>
    %c0_122 = arith.constant 0 : index
    %c0_123 = arith.constant 0 : index
    %103 = vector.load %arg5[%c0_122, %c0_123] : memref<52x384xbf16, #tpu.memory_space<vmem>>, vector<52x384xbf16>
    %cst = arith.constant dense<0.000000e+00> : vector<8x384xf32>
    %104 = tpu.matmul %102, %103, %cst {dimension_numbers = #tpu.dot_dimension_numbers<[1], [0], [0], [1], [0, 0, 1, 1], [], []>} : vector<8x52xbf16>, vector<52x384xbf16>, vector<8x384xf32> -> vector<8x384xf32>
    %c0_124 = arith.constant 0 : index
    %c0_125 = arith.constant 0 : index
    %105 = vector.load %arg3[%c0_124, %c0_125] : memref<8x1xf32, #tpu.memory_space<vmem>>, vector<8x1xf32>
    %106 = vector.broadcast %105 : vector<8x1xf32> to vector<8x384xf32>
    %107 = arith.addf %104, %106 : vector<8x384xf32>
    %c0_126 = arith.constant 0 : index
    %c0_127 = arith.constant 0 : index
    %c0_128 = arith.constant 0 : index
    %108 = vector.load %arg4[%c0_126, %c0_127, %c0_128] : memref<1x8x384xf32, #tpu.memory_space<vmem>>, vector<1x8x384xf32>
    %109 = vector.shape_cast %108 : vector<1x8x384xf32> to vector<8x384xf32>
    %110 = vector.shape_cast %107 : vector<8x384xf32> to vector<1x8x384xf32>
    tpu.vector_store %arg4[%c0_126, %c0_127, %c0_128], %110 {strides = array<i32>} : memref<1x8x384xf32, #tpu.memory_space<vmem>>, vector<1x8x384xf32>,
    return
  }
  func.func @transform_0(%arg0: i32) -> (i32, i32, i32) {
    %c0_i32 = arith.constant 0 : i32
    %c0_i32_0 = arith.constant 0 : i32
    %c0_i32_1 = arith.constant 0 : i32
    return %arg0, %c0_i32, %c0_i32_0 : i32, i32, i32
  }
  func.func @transform_1(%arg0: i32) -> (i32, i32) {
    %c0_i32 = arith.constant 0 : i32
    %c0_i32_0 = arith.constant 0 : i32
    %c0_i32_1 = arith.constant 0 : i32
    return %c0_i32, %c0_i32_0 : i32, i32
  }
  func.func @transform_2(%arg0: i32) -> (i32, i32) {
    %c0_i32 = arith.constant 0 : i32
    %c0_i32_0 = arith.constant 0 : i32
    %c0_i32_1 = arith.constant 0 : i32
    return %c0_i32, %c0_i32_0 : i32, i32
  }
  func.func @transform_3(%arg0: i32) -> (i32, i32, i32) {
    %c0_i32 = arith.constant 0 : i32
    %c0_i32_0 = arith.constant 0 : i32
    %c0_i32_1 = arith.constant 0 : i32
    return %arg0, %c0_i32, %c0_i32_0 : i32, i32, i32
  }
}

</mosaic_0001>

<bundles_post_ra>
// kernel: tpu_custom_call.1
= control target key start
LH: loop header
LB: loop body
LE: loop exit
PB: predicated region body
PF: predicated region fallthrough
CT: control target
= control target key end

     0   :  { %8 = vsyncpa [#allocation4], 0  ;;  %s3085_s0 = inlined_call_operand.hbm [shape: bf16[2,4,512], index: 0, kind: input, shape index: {}]   ;;  %s3086_s1 = inlined_call_operand.vmem [shape: bf16[8,52], index: 1, kind: input, shape index: {}]   ;;  %s3087_s2 = inlined_call_operand.vmem [shape: f32[8,1], index: 2, kind: input, shape index: {}]   ;;  %s3088_s3 = inlined_call_operand.hbm [shape: f32[2,8,384], index: 3, kind: output, shape index: {}]  }
   0x1   :  { %10 = vsyncpa [#allocation4 + $0x1], 0 }
   0x2   :  { %11 = vsyncpa [#allocation5], 0 }
   0x3   :  { %13 = vsyncpa [#allocation5 + $0x1], 0  ;;  %s2249_s12 = smov 0   ;;  %s2251_s13 = smov 0  }
   0x4   :  { %s2253_s14 = smov 0   ;;  %s2255_s15 = smov 0  }
   0x5 LB: > { %s2270_s16 = sadd.s32 4294967295, %s2197_s15   ;;  %s1914_s17 = sadd.s32 4294967294, %s2197_s15   ;;  %s2197_s15 = sphi %s2255_s15, %s3305_s15   ;;  %s2193_s14 = sphi %s2253_s14, %s3304_s14   ;;  %s2189_s13 = sphi %s2251_s13, %s3303_s13   ;;  %s2185_s12 = sphi %s2249_s12, %s3302_s12  }
   0x6   : > { %s2274_s18 = sadd.s32 1, %s2197_s15   ;;  %s26_s19 = sadd.s32 1, %s2193_s14 }
   0x7   : > { %s23_s20 = ssub.s32 %s2197_s15, %s2274_s18  ;;  %p33_p0 = scmp.ne.s32.totalorder %s2193_s14, %s2189_s13 }
   0x8   : > { %p24_p1 = scmp.eq.s32.totalorder %s23_s20, 0  ;;  %p34_p2 = scmp.eq.s32.totalorder %s2197_s15, 0 }
   0x9   : > { %p39_p3 = scmp.ne.s32.totalorder %s2189_s13, %s2185_s12  ;;  %p40_p4 = scmp.eq.s32.totalorder %s2270_s16, 0 }
   0xa   : > { %s2286_s21 = scalar_select %p24_p1, %s2193_s14, %s26_s19  }
   0xb   : > { %p2288_p5 = por %p34_p2, %p33_p0  ;;  %p2292_p6 = por %p40_p4, %p39_p3 }
   0xc   : > { %p105_p7 = scmp.eq.s32.totalorder %s2270_s16, 1  ;;  %p111_p8 = scmp.eq.s32.totalorder %s1914_s17, 1 }
   0xd   : > { %p1990_p10 = scmp.lt.s32.totalorder %s2197_s15, 2  ;;  %s137_s26 = sand.u32 1, %s2193_s14  }
   0xe   : > { %p2299_p11 = por %p105_p7, %p33_p0  ;;  %p2303_p12 = por %p111_p8, %p39_p3 }
   0xf   : > { %s1958_s27 = sshll.u32 %s2197_s15, 7  ;;  %s1917_s28 = sshll.u32 %s137_s26, 3 }
  0x10   : > { %s3130_s24 = scalar_select %p2299_p11, 1, 0 }
  0x11   : > { %s3131_s25 = scalar_select %p2303_p12, 1, 0 }
  0x12   : > { %s2312_s4 = scalar_lea.hbm %s3085_s0, %s1958_s27  ;;  %s141_s5 = scalar_lea.vmem [#allocation3], %s1917_s28 }
  0x13   : > { %s149_s6 = sshll.u32 %s141_s5, 4  ;;  %p2316_p13 = pnand %p1990_p10, %p2288_p5  ;;  %s2320_s6 = int_to_ptr.vmem [resolvable:$true] %s149_s6 }
  0x14   : > { %s138_s8 = scalar_lea.sflag [#allocation4], %s137_s26  ;;  %s2101_s9 = scalar_lea.hbm %s2312_s4, 128 }
  0x15   : > { %p2102_p2 = scmp.ne.s32.totalorder %s2312_s4, %s2101_s9  ;;  %p2103_p3 = pneg %p2316_p13 }
  0x16   : > { %s2106_s17 = scalar_lea.hbm %s3085_s0, 256  ;;  %p2107_p5 = scmp.lt.u32.totalorder %s2312_s4, %s3085_s0 }
  0x17   : > { %p2104_p4 = pnand %p2103_p3, %p2102_p2  ;;  %p2108_p8 = scmp.lt.u32.totalorder %s2106_s17, %s2101_s9 }
  0x18   : > { %p2110_p9 = scmp.lt.u32.totalorder %s2101_s9, %s2312_s4 }
  0x19   : > { %p2105_p7 = pneg %p2104_p4  ;;  %p2109_p10 = por %p2108_p8, %p2107_p5 }
  0x1b   : > { %p2111_p0 = por %p2110_p9, %p2109_p10 }
  0x1d   : > { %p2112_p1 = pnand %p2111_p0, %p2105_p7 }
  0x1f   : > { %2115 = shalt.err (!%p2112_p1)
}
  0x20   : > { %s2116_s22 = scalar_lea.vmem %s2320_s6, 128  ;;  %s2199_s26 = smov [#allocation3]  }
  0x21   : > { %p2117_p2 = scmp.ne.s32.totalorder %s2320_s6, %s2116_s22  ;;  %s2121_s27 = sshll.u32 %s2199_s26, 4  ;;  %s2122_s27 = int_to_ptr.vmem [resolvable:$false] %s2121_s27 }
  0x22   : > { %s2123_s28 = scalar_lea.vmem %s2122_s27, 256  ;;  %p2124_p11 = scmp.lt.s32.totalorder %s2320_s6, %s2122_s27 }
  0x23   : > { %p2119_p4 = pnand %p2117_p2, %p2103_p3  ;;  %p2125_p5 = scmp.lt.s32.totalorder %s2123_s28, %s2116_s22 }
  0x25   : > { %p2120_p12 = pneg %p2119_p4  ;;  %p2126_p8 = por %p2125_p5, %p2124_p11 }
  0x27   : > { %p2127_p9 = pnand %p2126_p8, %p2120_p12 }
  0x29   : > { %2130 = shalt.err (!%p2127_p9)
}
  0x2a   : > { %1985 = dma.hbm_to_vmem [thread:$0]  (!%p2316_p13), %s2312_s4, 128, %s2320_s6, %s138_s8  }
  0x2b   : > { %p3133_p0 = scmp.lt.s32.totalorder %s2197_s15, 3  ;;  %p3134_p1 = scmp.ge.s32.totalorder %s2197_s15, 1 }
  0x2d   : > { %p155_p3 = pnand %p3134_p1, %p3133_p0 }
  0x2e   : > { %s2354_s29 = sand.u32 (!%p155_p3), 1, %s2189_s13  }
  0x2f   : > { %158 = sbr.rel (%p155_p3) target bundleno = 563 (0x233), region = 32  ;;  %s1921_s30 = sshll.u32 (!%p155_p3), %s2354_s29, 3 }
  0x30   : > { %s161_s5 = scalar_lea.sflag (!%p155_p3), [#allocation4], %s2354_s29  ;;  %s2358_s9 = scalar_lea.vmem (!%p155_p3), [#allocation3], %s1921_s30 }
  0x36   : > { %2176 = dma.done.wait (%p2292_p6), %s161_s5, 128  }
  0x37   : > { %2178 = vsyncadd (%p2292_p6), %s161_s5, 4294967168  ;;  %v194_v0 = vlaneseq  ;;  %v2200_v1 = vmov 1983009808   ;;  %v402_v6 = vld [vmem:[%s2358_s9] sm:$0xff]  ;;  %s2201_s4 = smov 86   ;;  %s2202_s23 = smov 107  }
  0x38   : > { %v192_v2 = vunpack.c.l.s4 %v2200_v1  ;;  %v190_v8 = vcombine.high %v402_v6, %v402_v6  ;;  %v404_v9 = vcombine.low %v402_v6, %v402_v6  ;;  %v680_v12 = vld [vmem:[%s2358_s9] sm:$0xaa]  ;;  %s2203_s6 = smov 65   ;;  %s2204_s7 = smov 105   ;;  %vm3091_vm0 = vsmask.f32 7962 }
  0x39   : > { %v195_v3 = vshrl.u32 %v194_v0, 7  ;;  %v682_v15 = vcombine.high %v680_v12, %v680_v12  ;;  %v768_v16 = vld [vmem:[%s2358_s9] sm:$0xaa]  ;;  %s2205_s8 = smov 67   ;;  %s2206_s10 = smov 127   ;;  %vm3094_vm1 = vcmask 1046534  }
  0x3a   : > { %v193_v4 = vunpack.c.0.s8 %v192_v2  ;;  %v770_v18 = vcombine.high %v768_v16, %v768_v16  ;;  %v849_v23 = vld [vmem:[%s2358_s9] sm:$0xaa]  ;;  %s2207_s11 = smov 125   ;;  %s2208_s17 = smov 108   ;;  %vm760_vm2 = vmand %vm3094_vm1, %vm3091_vm0  ;;  %vm3095_vm3 = vcmask 1042434   ;;  %vm3096_vm7 = vcmask 1044484  }
  0x3b   : > { %v851_v29 = vcombine.high %v849_v23, %v849_v23  ;;  %v935_v36 = vld [vmem:[%s2358_s9] sm:$0xaa]  ;;  %s2209_s19 = smov 106   ;;  %s2210_s20 = smov 104   ;;  %vm3090_vm4 = vsmask.f32 7946 }
  0x3c   : > { %v2364_v5 = vsub.s32 %v193_v4, %v195_v3  ;;  %v1016_v37 = vld [vmem:[%s2358_s9] sm:$0xaa]  ;;  %v937_v39 = vcombine.high %v935_v36, %v935_v36  ;;  %s2211_s22 = smov 87   ;;  %s2212_s26 = smov 85   ;;  %vm2488_vm5 = vmand %vm3095_vm3, %vm3090_vm4  ;;  %vm3092_vm8 = vsmask.f32 7954 }
  0x3d   : > { %v1018_v43 = vcombine.high %v1016_v37, %v1016_v37  ;;  %v1096_v44 = vld [vmem:[%s2358_s9] sm:$0xaa]  ;;  %s2213_s27 = smov 68   ;;  %s2214_s28 = smov 66   ;;  %vm2494_vm6 = vmor %vm760_vm2, %vm2488_vm5  ;;  %vm3097_vm10 = vcmask 1040384   ;;  %vm3098_vm14 = vcmask 1043458  }
  0x3e   : > { %v2368_v7 = vrot.slane %v402_v6, %v2364_v5  ;;  %v2375_v10 = vrot.slane %v190_v8, %v2364_v5  ;;  %v411_v14 = vrot.slane %v404_v9, %v2364_v5  ;;  %v689_v17 = vrot.slane %v680_v12, %v2364_v5  ;;  %v1172_v52 = vld [vmem:[%s2358_s9] sm:$0xaa]  ;;  %s2215_s30 = smov 64   ;;  %s2217_s5 = smov 47   ;;  %vm927_vm9 = vmand %vm3096_vm7, %vm3092_vm8 }
  0x3f   : > { %v696_v22 = vrot.slane %v682_v15, %v2364_v5  ;;  %v777_v25 = vrot.slane %v768_v16, %v2364_v5  ;;  %v784_v28 = vrot.slane %v770_v18, %v2364_v5  ;;  %v865_v34 = vrot.slane %v851_v29, %v2364_v5  ;;  %v1255_v2 = vld [vmem:[%s2358_s9] sm:$0xaa]  ;;  %p3299_p11 = scmp.ne.s32.totalorder %s3130_s24, 0 }
  0x40   : > { %421 = vrot.lane.b32.xlu1 %v2368_v7, %s2201_s4  ;;  %205 = vrot.lane.b32.xlu0 %v2368_v7, %s2202_s23  ;;  %v306_v11 = vrot.slane %v2368_v7, 5  ;;  %v535_v19 = vrot.slane %v2375_v10, 7  ;;  %v534_v20 = vrot.slane %v2368_v7, 7  ;;  %v307_v21 = vrot.slane %v2375_v10, 5  ;;  %v1334_v3 = vld [vmem:[%s2358_s9] sm:$0xaa] }
  0x41   : > { %v698_v24 = vshrl.u32 %v689_v17, 16  ;;  %v702_v27 = vshrl.u32 %v696_v22, 16  ;;  %v786_v31 = vshrl.u32 %v777_v25, 16  ;;  %v790_v33 = vshrl.u32 %v784_v28, 16 }
  0x42   : > { %v308_v13 = vrot.slane %v306_v11, 4  ;;  %v309_v26 = vrot.slane %v307_v21, 4  ;;  %v858_v35 = vrot.slane %v849_v23, %v2364_v5  ;;  %v872_v41 = vshrl.u32 %v865_v34, 16 }
  0x43   : > { %v700_v30 = vrot.slane %v698_v24, 7  ;;  %v704_v32 = vrot.slane %v702_v27, 7  ;;  %v788_v38 = vrot.slane %v786_v31, 6  ;;  %v792_v40 = vrot.slane %v790_v33, 6 }
  0x44   : > { %634 = vrot.lane.b32.xlu1 %v2375_v10, %s2203_s6  ;;  %207 = vrot.lane.b32.xlu0 %v2375_v10, %s2202_s23  ;;  %v867_v42 = vshrl.u32 %v858_v35, 16  ;;  %v951_v45 = vrot.slane %v937_v39, %v2364_v5  ;;  %v944_v46 = vrot.slane %v935_v36, %v2364_v5  ;;  %v1025_v47 = vrot.slane %v1016_v37, %v2364_v5 }
  0x45   : > { %v1923_v48 = vrot.slane %v872_v41, 9  ;;  %v1032_v50 = vrot.slane %v1018_v43, %v2364_v5  ;;  %v1098_v51 = vcombine.high %v1096_v44, %v1096_v44  ;;  %v1105_v55 = vrot.slane %v1096_v44, %v2364_v5 }
  0x46   : > { %v1922_v49 = vrot.slane %v867_v42, 9  ;;  %v958_v53 = vshrl.u32 %v951_v45, 16  ;;  %v953_v54 = vshrl.u32 %v944_v46, 16  ;;  %v1034_v57 = vshrl.u32 %v1025_v47, 16  ;;  %v1490_v47 = vld [vmem:[%s2358_s9] sm:$0xaa] }
  0x47   : > { %v1038_v56 = vshrl.u32 %v1032_v50, 16  ;;  %v1112_v58 = vrot.slane %v1098_v51, %v2364_v5  ;;  %v1174_v59 = vcombine.high %v1172_v52, %v1172_v52  ;;  %v1114_v60 = vshrl.u32 %v1105_v55, 16 }
  0x48   : > { %314 = vrot.lane.b32.xlu1 %v308_v13, %s2204_s7  ;;  %419 = vrot.lane.b32.xlu0 %v411_v14, %s2201_s4  ;;  %v1181_v61 = vrot.slane %v1172_v52, %v2364_v5  ;;  %v1036_v63 = vrot.slane %v1034_v57, 7  ;;  %v1257_v6 = vcombine.high %v1255_v2, %v1255_v2  ;;  %v1336_v13 = vcombine.high %v1334_v3, %v1334_v3  ;;  %v1412_v14 = vld [vmem:[%s2358_s9] sm:$0xaa] }
  0x49   : > { %v1040_v62 = vrot.slane %v1038_v56, 7  ;;  %v1118_v0 = vshrl.u32 %v1112_v58, 16  ;;  %v1188_v1 = vrot.slane %v1174_v59, %v2364_v5  ;;  %v1116_v9 = vrot.slane %v1114_v60, 6 }
  0x4a   : > { %v1190_v4 = vshrl.u32 %v1181_v61, 16  ;;  %v1271_v16 = vrot.slane %v1257_v6, %v2364_v5  ;;  %v1264_v17 = vrot.slane %v1255_v2, %v2364_v5  ;;  %v1414_v22 = vcombine.high %v1412_v14, %v1412_v14 }
  0x4b   : > { %v1120_v8 = vrot.slane %v1118_v0, 6  ;;  %v1195_v12 = vshrl.u32 %v1188_v1, 16  ;;  %v1421_v24 = vrot.slane %v1412_v14, %v2364_v5  ;;  %v2437_v31 = vshll.u32 %v2375_v10, 16 }
  0x4c   : > { %538 = vrot.lane.b32.xlu1 %v535_v19, %s2205_s8  ;;  %536 = vrot.lane.b32.xlu0 %v534_v20, %s2205_s8  ;;  %v1928_v15 = vrot.slane %v1190_v4, 9  ;;  %v1350_v19 = vrot.slane %v1336_v13, %v2364_v5  ;;  %v1343_v20 = vrot.slane %v1334_v3, %v2364_v5  ;;  %v1273_v23 = vshrl.u32 %v1264_v17, 16 }
  0x4d   : > { %v1929_v18 = vrot.slane %v1195_v12, 9  ;;  %v1278_v25 = vshrl.u32 %v1271_v16, 16  ;;  %v1428_v28 = vrot.slane %v1414_v22, %v2364_v5  ;;  %v1430_v29 = vshrl.u32 %v1421_v24, 16  ;;  %v894_v24 = vld [vmem:[%s2358_s9] sm:$0xaa] }
  0x4e   : > { %v1352_v27 = vshrl.u32 %v1343_v20, 16  ;;  %v2443_v36 = vshll.u32 %v2368_v7, 16  ;;  %v262_v39 = vrot.slane %v2437_v31, 7  ;;  %v468_v52 = vrot.slane %v2437_v31, 5 }
  0x4f   : > { %v1434_v35 = vshrl.u32 %v1428_v28, 16  ;;  %v1432_v37 = vrot.slane %v1430_v29, 6  ;;  %v3137_v13 = vmov 0  ;;  %vm3093_vm11 = vsmask.f32 7938 }
  0x50   : > { %316 = vrot.lane.b32.xlu1 %v309_v26, %s2204_s7  ;;  %632 = vrot.lane.b32.xlu0 %v2368_v7, %s2203_s6  ;;  %v1356_v26 = vshrl.u32 %v1350_v19, 16  ;;  %v1354_v34 = vrot.slane %v1352_v27, 7  ;;  %v254_v42 = vrot.slane %v2443_v36, 7  ;;  %v3138_v13 = vsel %vm2494_vm6, 4294967295, %v3137_v13  ;;  %vm2510_vm12 = vmand %vm3097_vm10, %vm3093_vm11 }
  0x51   : > { %v1436_v41 = vrot.slane %v1434_v35, 6  ;;  %v903_v29 = vrot.slane %v894_v24, %v2364_v5  ;;  %vm2519_vm13 = vmor %vm927_vm9, %vm2510_vm12  ;;  %vm3101_vm15 = vsmask.f32 3328  ;;  %vm3099_vm2 = vcmask 1041408  }
  0x52   : > { %v1358_v33 = vrot.slane %v1356_v26, 7  ;;  %v3139_v26 = vmov 0  ;;  %vm3100_vm9 = vsmask.f32 1280  ;;  %vm3104_vm0 = vcmask 531456   ;;  %vm2555_vm1 = vmand %vm3098_vm14, %vm3101_vm15 }
  0x53   : > { %v3140_v26 = vsel %vm2510_vm12, 4294967295, %v3139_v26  ;;  %vm3102_vm8 = vcmask 1045508   ;;  %vm3103_vm11 = vsmask.f32 5376  ;;  %vm3106_vm3 = vcmask 1043456   ;;  %vm2562_vm4 = vmand %vm3099_vm2, %vm3100_vm9 }
  0x54   : > { %707 = vrot.lane.b32.xlu1 %v704_v32, %s2206_s10  ;;  %705 = vrot.lane.b32.xlu0 %v700_v30, %s2206_s10  ;;  %v2434_v30 = vshrl.u32 %v2375_v10, 16  ;;  %v2440_v32 = vshrl.u32 %v2368_v7, 16  ;;  %v582_v7 = vrot.slane %v2443_v36, 6  ;;  %s2218_s10 = smov 45   ;;  %vm3107_vm7 = vcmask 875520   ;;  %vm2577_vm9 = vmand %vm3102_vm8, %vm3103_vm11 }
  0x55   : > { %vm3147_vm14 = vcmask 703488   ;;  %vm3105_vm2 = vsmask.f32 7424  ;;  %vm3108_vm15 = vcmask 1042433   ;;  %vm3110_vm10 = vsmask.f32 2304  ;;  %vm3109_vm11 = vmor %vm2577_vm9, %vm2562_vm4 }
  0x56   : > { %v375_v45 = vrot.slane %v2434_v30, 7  ;;  %v368_v46 = vrot.slane %v2440_v32, 7  ;;  %v579_v1 = vrot.slane %v2440_v32, 5 }
  0x58   : > { %795 = vrot.lane.b32.xlu1 %v792_v40, %s2207_s11  ;;  %793 = vrot.lane.b32.xlu0 %v788_v38, %s2207_s11  ;;  %v259_v38 = vrot.slane %v2434_v30, 6  ;;  %v251_v40 = vrot.slane %v2440_v32, 6  ;;  %v378_v50 = vor.u32 %v375_v45, %v2437_v31  ;;  %v371_v51 = vor.u32 %v368_v46, %v2443_v36  ;;  %s2219_s11 = smov 126  }
  0x59   : > { %v583_v10 = vor.u32 %v582_v7, %v579_v1  ;;  %v441_v7 = vld [vmem:[#allocation2 + $0x14] sm:$0xc] }
  0x5a   : > { %v263_v43 = vor.u32 %v262_v39, %v259_v38  ;;  %v255_v44 = vor.u32 %v254_v42, %v251_v40  ;;  %v1138_v42 = vld [vmem:[%s2358_s9] sm:$0xaa] }
  0x5b   : > { %v1140_v46 = vcombine.low %v1138_v42, %v1138_v42 }
  0x5c   : > { %878 = vrot.lane.b32.xlu1 %v1923_v48, %s2208_s17  ;;  %876 = vrot.lane.b32.xlu0 %v1922_v49, %s2208_s17  ;;  %v464_v48 = vrot.slane %v2443_v36, 5  ;;  %v1499_v49 = vrot.slane %v1490_v47, %v2364_v5  ;;  %s2220_s17 = smov 124   ;;  %v982_v36 = vld [vmem:[%s2358_s9] sm:$0xaa] }
  0x5d   : > { %v984_v39 = vcombine.high %v982_v36, %v982_v36 }
  0x5e   : > { %v2052_v55 = vpack.i.bf16 %v468_v52, %v464_v48  ;;  %v1508_v56 = vshrl.u32 %v1499_v49, 16  ;;  %v1147_v49 = vrot.slane %v1140_v46, %v2364_v5  ;;  %v438_v46 = vld [vmem:[#allocation2 + $0xc] sm:$0xcc] }
  0x60   : > { %964 = vrot.lane.b32.xlu1 %v958_v53, %s2209_s19  ;;  %962 = vrot.lane.b32.xlu0 %v953_v54, %s2209_s19  ;;  %v1492_v53 = vcombine.high %v1490_v47, %v1490_v47  ;;  %v1574_v54 = vld [vmem:[%s2358_s9] sm:$0xaa]  ;;  %v1934_v60 = vrot.slane %v1508_v56, 9 }
  0x61   : > { %v1576_v58 = vcombine.high %v1574_v54, %v1574_v54  ;;  %v1583_v59 = vrot.slane %v1574_v54, %v2364_v5  ;;  %v1216_v47 = vld [vmem:[%s2358_s9] sm:$0xaa] }
  0x62   : > { %v1506_v57 = vrot.slane %v1492_v53, %v2364_v5  ;;  %v1376_v56 = vld [vmem:[%s2358_s9] sm:$0xaa] }
  0x63   : > { %v1592_v0 = vshrl.u32 %v1583_v59, 16 }
  0x64   : > { %1043 = vrot.lane.b32.xlu1 %v1040_v62, %s2210_s20  ;;  %1041 = vrot.lane.b32.xlu0 %v1036_v63, %s2210_s20  ;;  %v1513_v61 = vshrl.u32 %v1506_v57, 16  ;;  %v1590_v62 = vrot.slane %v1576_v58, %v2364_v5  ;;  %v2216_v63 = vmov 0.0  }
  0x65   : > { %1964 = vmatprep.subr.bf16.mxu1 %v2216_v63 }
  0x66   : > { %v1935_v2 = vrot.slane %v1513_v61, 9  ;;  %v1597_v3 = vshrl.u32 %v1590_v62, 16  ;;  %v1378_v61 = vcombine.high %v1376_v56, %v1376_v56  ;;  %v2549_v62 = vld [vmem:[%s2358_s9] sm:$0xaa] }
  0x68   : > { %1123 = vrot.lane.b32.xlu1 %v1120_v8, %s2211_s22  ;;  %1121 = vrot.lane.b32.xlu0 %v1116_v9, %s2211_s22  ;;  %v590_v8 = vrot.slane %v2437_v31, 6  ;;  %v814_v9 = vld [vmem:[%s2358_s9] sm:$0xaa] }
  0x69   : > { %v1059_v31 = vld [vmem:[%s2358_s9] sm:$0xaa] }
  0x6a   : > { %v1068_v40 = vrot.slane %v1059_v31, %v2364_v5 }
  0x6c   : > { %1201 = vrot.lane.b32.xlu1 %v1929_v18, %s2212_s26  ;;  %1199 = vrot.lane.b32.xlu0 %v1928_v15, %s2212_s26  ;;  %v816_v15 = vcombine.low %v814_v9, %v814_v9  ;;  %v471_v18 = vrot.slane %v2440_v32, 4  ;;  %v3141_v32 = vmov 0 }
  0x6d   : > { %v3142_v32 = vsel %vm2519_vm13, 4294967295, %v3141_v32  ;;  %vm339_vm13 = vsmask.f32 4352 }
  0x6e   : > { %v823_v20 = vrot.slane %v816_v15, %v2364_v5  ;;  %v472_v22 = vor.u32 %v471_v18, %v464_v48  ;;  %v1535_v15 = vld [vmem:[%s2358_s9] sm:$0xaa]  ;;  %v228_v18 = vld [vmem:[#allocation2 + $0x8] sm:$0x3] }
  0x70   : > { %1284 = vrot.lane.b32.xlu1 %v1278_v25, %s2213_s27  ;;  %1282 = vrot.lane.b32.xlu0 %v1273_v23, %s2213_s27  ;;  %v476_v23 = vrot.slane %v2434_v30, 4  ;;  %v830_v25 = vrot.slane %v814_v9, %v2364_v5  ;;  %v473_v27 = vrot.slane %v472_v22, 4  ;;  %v647_v9 = vld [vmem:[#allocation2 + $0x2c] sm:$0x3]  ;;  %s1977_s27 = smul.u32 384, %s2270_s16  ;;  %s1830_s16 = scalar_lea.sflag [#allocation5], %s2354_s29 }
  0x72   : > { %v477_v28 = vor.u32 %v476_v23, %v468_v52  ;;  %v1154_v52 = vrot.slane %v1138_v42, %v2364_v5 }
  0x74   : > { %1361 = vrot.lane.b32.xlu1 %v1358_v33, %s2214_s28  ;;  %1359 = vrot.lane.b32.xlu0 %v1354_v34, %s2214_s28  ;;  %v478_v33 = vrot.slane %v477_v28, 4  ;;  %v1924_v34 = vrot.slane %v903_v29, 9  ;;  %v1544_v28 = vrot.slane %v1535_v15, %v2364_v5  ;;  %v1537_v29 = vcombine.high %v1535_v15, %v1535_v15  ;;  %v1449_v15 = vld [vmem:[#allocation2 + $0x3c] sm:$0x88] }
  0x78   : > { %1439 = vrot.lane.b32.xlu1 %v1436_v41, %s2215_s30  ;;  %1437 = vrot.lane.b32.xlu0 %v1432_v37, %s2215_s30  ;;  %v991_v37 = vrot.slane %v982_v36, %v2364_v5  ;;  %v1061_v41 = vcombine.high %v1059_v31, %v1059_v31 }
  0x7a   : > { %v1075_v45 = vrot.slane %v1061_v41, %v2364_v5 }
  0x7c   : > { %266 = vrot.lane.b32.xlu1 %v263_v43, %s2209_s19  ;;  %264 = vrot.lane.b32.xlu0 %v255_v44, %s2209_s19  ;;  %v998_v43 = vrot.slane %v984_v39, %v2364_v5  ;;  %v1076_v44 = vrot.slane %v1068_v40, 7  ;;  %s2221_s19 = smov 88   ;;  %v1077_v48 = vrot.slane %v1075_v45, 7 }
  0x80   : > { %381 = vrot.lane.b32.xlu1 %v378_v50, %s2211_s22  ;;  %379 = vrot.lane.b32.xlu0 %v371_v51, %s2211_s22  ;;  %v1225_v50 = vrot.slane %v1216_v47, %v2364_v5  ;;  %v1218_v51 = vcombine.high %v1216_v47, %v1216_v47  ;;  %v1471_v47 = vrot.slane %v2549_v62, %v2364_v5 }
  0x82   : > { %v1930_v53 = vrot.slane %v1225_v50, 9  ;;  %v1232_v54 = vrot.slane %v1218_v51, %v2364_v5  ;;  %v1619_v51 = vld [vmem:[%s2358_s9] sm:$0xaa] }
  0x84   : > { %2053 = vrot.lane.b32.xlu0 %v2052_v55, %s2212_s26  ;;  %310 = vrot.lane.b32.xlu1 %v306_v11, %s2204_s7  ;;  %v728_v11 = vld [vmem:[%s2358_s9] sm:$0xaa]  ;;  %v1931_v58 = vrot.slane %v1232_v54, 9 }
  0x85   : > { %v737_v4 = vrot.slane %v728_v11, %v2364_v5  ;;  %v730_v6 = vcombine.high %v728_v11, %v728_v11  ;;  %v1300_v55 = vld [vmem:[%s2358_s9] sm:$0xaa] }
  0x86   : > { %v1309_v57 = vrot.slane %v1300_v55, %v2364_v5  ;;  %v1302_v59 = vcombine.high %v1300_v55, %v1300_v55 }
  0x87   : > { %v744_v14 = vrot.slane %v730_v6, %v2364_v5  ;;  %v745_v17 = vrot.slane %v737_v4, 7 }
  0x88   : > { %312 = vrot.lane.b32.xlu0 %v307_v21, %s2204_s7  ;;  %1517 = vrot.lane.b32.xlu1 %v1934_v60, %s2217_s5  ;;  %v587_v21 = vrot.slane %v2434_v30, 5  ;;  %v896_v30 = vcombine.high %v894_v24, %v894_v24  ;;  %v1385_v60 = vrot.slane %v1376_v56, %v2364_v5  ;;  %v1316_v4 = vrot.slane %v1302_v59, %v2364_v5  ;;  %v556_v56 = vld [vmem:[#allocation2 + $0x20] sm:$0x6] }
  0x89   : > { %v746_v19 = vrot.slane %v744_v14, 7  ;;  %v722_v14 = vld [vmem:[#allocation2 + $0x24] sm:$0x44] }
  0x8a   : > { %v591_v16 = vor.u32 %v590_v8, %v587_v21  ;;  %v910_v35 = vrot.slane %v896_v30, %v2364_v5  ;;  %v1393_v6 = vrot.slane %v1385_v60, 7  ;;  %v1457_v21 = vcombine.low %v2549_v62, %v2549_v62  ;;  %v2596_v30 = vld [vmem:[%s2358_s9] sm:$0x2a]  ;;  %s2224_s9 = smov 46  }
  0x8b   : > { %v652_v45 = vcombine.high %v2596_v30, %v2596_v30 }
  0x8c   : > { %1519 = vrot.lane.b32.xlu0 %v1935_v2, %s2217_s5  ;;  %1601 = vrot.lane.b32.xlu1 %v1592_v0, %s2218_s10  ;;  %v1925_v38 = vrot.slane %v910_v35, 9  ;;  %v3166_v2 = vmov 0 }
  0x8d   : > { %v666_v60 = vrot.slane %v652_v45, %v2364_v5 }
  0x90   : > { %1603 = vrot.lane.b32.xlu0 %v1597_v3, %s2218_s10  ;;  %592 = vrot.lane.b32.xlu1 %v583_v10, %s2214_s28  ;;  %v1392_v10 = vrot.slane %v1378_v61, %v2364_v5  ;;  %v553_v61 = vld [vmem:[#allocation2 + $0x18] sm:$0x66] }
  0x92   : > { %v1394_v24 = vrot.slane %v1392_v10, 7 }
  0x94   : > { %594 = vrot.lane.b32.xlu0 %v591_v16, %s2214_s28  ;;  %747 = vrot.lane.b32.xlu1 %v745_v17, %s2219_s11 }
  0x98   : > { %749 = vrot.lane.b32.xlu0 %v746_v19, %s2219_s11  ;;  %831 = vrot.lane.b32.xlu1 %v823_v20, %s2220_s17  ;;  %s3041_s11 = scalar_lea.hbm %s3088_s3, %s1977_s27 }
  0x9c   : > { %833 = vrot.lane.b32.xlu0 %v830_v25, %s2220_s17  ;;  %483 = vrot.lane.b32.xlu1 %v473_v27, %s2212_s26  ;;  %v1464_v25 = vrot.slane %v1457_v21, %v2364_v5  ;;  %v225_v27 = vld [vmem:[#allocation2] sm:$0x33] }
  0xa0   : > { %485 = vrot.lane.b32.xlu0 %v478_v33, %s2212_s26  ;;  %915 = vrot.lane.b32.xlu1 %v1924_v34, %s2202_s23  ;;  %s1976_s26 = smul.u32 24, %s2354_s29 }
  0xa2   : > { %s186_s28 = scalar_lea.vmem [#allocation6], %s1976_s26 }
  0xa3   : > { %s1844_s30 = sshll.u32 %s186_s28, 4  ;;  %s3043_s30 = int_to_ptr.vmem [resolvable:$true] %s1844_s30 }
  0xa4   : > { %917 = vrot.lane.b32.xlu0 %v1925_v38, %s2202_s23  ;;  %999 = vrot.lane.b32.xlu1 %v991_v37, %s2204_s7  ;;  %s2222_s23 = smov 84   ;;  %s2131_s17 = scalar_lea.vmem %s3043_s30, 384 }
  0xa5   : > { %p2132_p6 = scmp.ne.s32.totalorder %s3043_s30, %s2131_s17 }
  0xa7   : > { %p2133_p12 = pnand %p2132_p6, %p3299_p11 }
  0xa8   : > { %1001 = vrot.lane.b32.xlu0 %v998_v43, %s2204_s7  ;;  %1078 = vrot.lane.b32.xlu1 %v1076_v44, %s2221_s19 }
  0xa9   : > { %p2134_p13 = pneg %p2133_p12 }
  0xac   : > { %1080 = vrot.lane.b32.xlu0 %v1077_v48, %s2221_s19  ;;  %1155 = vrot.lane.b32.xlu1 %v1147_v49, %s2201_s4  ;;  %v1936_v48 = vrot.slane %v1544_v28, 9  ;;  %v1551_v49 = vrot.slane %v1537_v29, %v2364_v5  ;;  %s2228_s19 = smov [#allocation6]  }
  0xae   : > { %v1937_v62 = vrot.slane %v1551_v49, 9 }
  0xb0   : > { %1157 = vrot.lane.b32.xlu0 %v1154_v52, %s2201_s4  ;;  %1237 = vrot.lane.b32.xlu1 %v1930_v53, %s2222_s23  ;;  %s2223_s4 = smov 48  }
  0xb2   : > { %v2551_v0 = vpop.permute.xlu1 %421  ;;  %v206_v1 = vpop.permute.xlu0 %205 }
  0xb3   : > { %v424_v11 = vrot.slane %v2551_v0, 4  ;;  %v209_v20 = vrot.slane %v206_v1, 4 }
  0xb4   : > { %1239 = vrot.lane.b32.xlu0 %v1931_v58, %s2222_s23  ;;  %1317 = vrot.lane.b32.xlu1 %v1309_v57, %s2205_s8  ;;  %s2135_s23 = sshll.u32 %s2228_s19, 4  ;;  %s2136_s23 = int_to_ptr.vmem [resolvable:$false] %s2135_s23 }
  0xb5   : > { %v428_v8 = vsel %vm3147_vm14, %v2551_v0, %v424_v11  ;;  %vm3150_vm14 = vcmask 1047558   ;;  %v1628_v0 = vrot.slane %v1619_v51, %v2364_v5  ;;  %p2138_p7 = scmp.lt.s32.totalorder %s3043_s30, %s2136_s23 }
  0xb6   : > { %v442_v16 = vsel %vm2555_vm1, %v428_v8, %v441_v7  ;;  %v2584_v17 = vpop.permute.xlu1 %634  ;;  %v208_v19 = vpop.permute.xlu0 %207  ;;  %vm2606_vm8 = vmand %vm3150_vm14, %vm3105_vm2  ;;  %vm3155_vm14 = vsmask.f32 6400  ;;  %vm3156_vm2 = vcmask 1046533  }
  0xb7   : > { %443 = vst [vmem:[#allocation2 + $0x14] sm:$0xc] %v442_v16  ;;  %v637_v22 = vrot.slane %v2584_v17, 4  ;;  %v210_v23 = vrot.slane %v208_v19, 4  ;;  %vm3161_vm12 = vmor %vm2606_vm8, %vm2555_vm1  ;;  %vm3168_vm8 = vcmask 547840  }
  0xb8   : > { %1319 = vrot.lane.b32.xlu0 %v1316_v4, %s2205_s8  ;;  %1395 = vrot.lane.b32.xlu1 %v1393_v6, %s2203_s6  ;;  %v1669_v4 = vld [vmem:[%s3087_s2] sm:$0xff] }
  0xb9   : > { %v641_v33 = vsel %vm3104_vm0, %v2584_v17, %v637_v22  ;;  %v212_v34 = vsel %vm3106_vm3, %v209_v20, %v210_v23  ;;  %v215_v35 = vsel %vm3107_vm7, %v208_v19, %v210_v23  ;;  %vm2619_vm0 = vmand %vm3108_vm15, %vm3110_vm10  ;;  %vm3115_vm15 = vcmask 1041409   ;;  %v345_v19 = vld [vmem:[#allocation2 + $0x14] sm:$0x1]  ;;  %v644_v23 = vld [vmem:[#allocation2 + $0x24] sm:$0x33] }
  0xba   : > { %v648_v31 = vsel %vm2562_vm4, %v641_v33, %v647_v9  ;;  %v214_v37 = vsel %vm3107_vm7, %v206_v1, %v212_v34  ;;  %v229_v38 = vsel %vm2562_vm4, %v215_v35, %v228_v18  ;;  %v2615_v39 = vpop.permute.xlu1 %314  ;;  %v420_v40 = vpop.permute.xlu0 %419  ;;  %vm2625_vm3 = vmand %vm3156_vm2, %vm3155_vm14  ;;  %vm3159_vm14 = vcmask 1043456   ;;  %v342_v33 = vld [vmem:[#allocation2 + $0xc] sm:$0x11] }
  0xbb   : > { %649 = vst [vmem:[#allocation2 + $0x2c] sm:$0x3] %v648_v31  ;;  %230 = vst [vmem:[#allocation2 + $0x8] sm:$0x3] %v229_v38  ;;  %v423_v42 = vrot.slane %v420_v40, 4  ;;  %v226_v44 = vsel %vm3109_vm11, %v214_v37, %v225_v27  ;;  %vm3160_vm10 = vcmask 703488   ;;  %v1621_v1 = vcombine.high %v1619_v51, %v1619_v51 }
  0xbc   : > { %1397 = vrot.lane.b32.xlu0 %v1394_v24, %s2203_s6  ;;  %1472 = vrot.lane.b32.xlu1 %v1464_v25, %s2223_s4  ;;  %227 = vst [vmem:[#allocation2] sm:$0x33] %v226_v44  ;;  %vm3114_vm11 = vsmask.f32 7942  ;;  %v320_v6 = vrot.slane %v2615_v39, 4  ;;  %vm3173_vm2 = vmmov %vm3168_vm8  ;;  %s2225_s6 = smov 44  }
  0xbd   : > { %v425_v50 = vsel %vm3159_vm14, %v423_v42, %v424_v11  ;;  %vm3162_vm14 = vsmask.f32 256  ;;  %vm2668_vm1 = vmand %vm3115_vm15, %vm3114_vm11  ;;  %vm3117_vm11 = vcmask 859136   ;;  %vm3174_vm15 = vsmask.f32 2304 }
  0xbe   : > { %v427_v52 = vsel %vm3160_vm10, %v420_v40, %v425_v50  ;;  %v539_v53 = vpop.permute.xlu1 %538  ;;  %v537_v54 = vpop.permute.xlu0 %536  ;;  %vm3163_vm10 = vcmask 1040384   ;;  %v3167_v2 = vsel %vm2668_vm1, 4294967295, %v3166_v2  ;;  %v1635_v28 = vrot.slane %v1621_v1, %v2364_v5 }
  0xbf   : > { %v439_v55 = vsel %vm3161_vm12, %v427_v52, %v438_v46  ;;  %v541_v57 = vrot.slane %v539_v53, 4  ;;  %v540_v58 = vrot.slane %v537_v54, 4  ;;  %vm2660_vm7 = vmand %vm3163_vm10, %vm3162_vm14  ;;  %vm3169_vm12 = vcmask 1043456  }
  0xc0   : > { %440 = vst [vmem:[#allocation2 + $0xc] sm:$0xcc] %v439_v55  ;;  %1474 = vrot.lane.b32.xlu0 %v1471_v47, %s2223_s4  ;;  %1556 = vrot.lane.b32.xlu1 %v1936_v48, %s2224_s9  ;;  %vm3170_vm14 = vcmask 1044484   ;;  %v3204_v1 = vmov 0  ;;  %s2137_s4 = scalar_lea.vmem %s2136_s23, 768 }
  0xc1   : > { %v545_v7 = vsel %vm3168_vm8, %v539_v53, %v541_v57  ;;  %v542_v11 = vsel %vm3169_vm12, %v540_v58, %v541_v57  ;;  %vm2676_vm10 = vmand %vm3170_vm14, %vm339_vm13  ;;  %vm3175_vm8 = vcmask 1042434   ;;  %vm3180_vm12 = vcmask 1046534   ;;  %v808_v58 = vld [vmem:[#allocation2 + $0x24] sm:$0x88]  ;;  %p2139_p10 = scmp.lt.s32.totalorder %s2137_s4, %s2131_s17 }
  0xc2   : > { %v557_v10 = vsel %vm2619_vm0, %v545_v7, %v556_v56  ;;  %v544_v21 = vsel %vm3173_vm2, %v537_v54, %v542_v11  ;;  %v317_v8 = vpop.permute.xlu1 %316  ;;  %v633_v9 = vpop.permute.xlu0 %632  ;;  %vm2686_vm6 = vmand %vm3175_vm8, %vm3174_vm15  ;;  %v677_v16 = vld [vmem:[#allocation2 + $0x2c] sm:$0x2]  ;;  %vm3179_vm2 = vsmask.f32 6400  ;;  %vm712_vm15 = vcmask 1039360  }
  0xc3   : > { %558 = vst [vmem:[#allocation2 + $0x20] sm:$0x6] %v557_v10  ;;  %vm3178_vm13 = vmor %vm2625_vm3, %vm2619_vm0  ;;  %v321_v20 = vrot.slane %v317_v8, 4  ;;  %v636_v24 = vrot.slane %v633_v9, 4  ;;  %v678_v27 = vsel %vm2668_vm1, %v666_v60, %v677_v16  ;;  %vm3118_vm0 = vcmask 1043459   ;;  %p2140_p2 = por %p2139_p10, %p2138_p7 }
  0xc4   : > { %v554_v18 = vsel %vm3178_vm13, %v544_v21, %v553_v61  ;;  %vm2697_vm14 = vmand %vm3180_vm12, %vm3179_vm2  ;;  %1558 = vrot.lane.b32.xlu0 %v1937_v62, %s2224_s9  ;;  %1636 = vrot.lane.b32.xlu1 %v1628_v0, %s2225_s6  ;;  %679 = vst [vmem:[#allocation2 + $0x2c] sm:$0x2] %v678_v27  ;;  %vm3185_vm13 = vcmask 1043456   ;;  %vm671_vm12 = vcmask 1045509   ;;  %vm3119_vm3 = vsmask.f32 7958 }
  0xc5   : > { %555 = vst [vmem:[#allocation2 + $0x18] sm:$0x66] %v554_v18  ;;  %vm2708_vm8 = vmor %vm2676_vm10, %vm2660_vm7  ;;  %v326_v34 = vsel %vm3185_vm13, %v320_v6, %v321_v20  ;;  %v328_v35 = vsel %vm3117_vm11, %v317_v8, %v321_v20  ;;  %vm3187_vm10 = vcmask 531456   ;;  %v811_v54 = vld [vmem:[#allocation2 + $0x2c] sm:$0x8]  ;;  %v659_v60 = vrot.slane %v2596_v30, %v2364_v5  ;;  %p2141_p4 = pnand %p2140_p2, %p2134_p13 }
  0xc6   : > { %vm3186_vm2 = vmmov %vm3185_vm13  ;;  %v327_v31 = vsel %vm3117_vm11, %v2615_v39, %v326_v34  ;;  %v346_v37 = vsel %vm2660_vm7, %v328_v35, %v345_v19  ;;  %v708_v40 = vpop.permute.xlu1 %707  ;;  %v706_v41 = vpop.permute.xlu0 %705  ;;  %v2227_v61 = vmov 0   ;;  %v891_v10 = vld [vmem:[#allocation2 + $0x38] sm:$0x1]  ;;  %v888_v16 = vld [vmem:[#allocation2 + $0x30] sm:$0x11] }
  0xc7   : > { %v638_v36 = vsel %vm3186_vm2, %v636_v24, %v637_v22  ;;  %347 = vst [vmem:[#allocation2 + $0x14] sm:$0x1] %v346_v37  ;;  %vm3188_vm13 = vmor %vm2577_vm9, %vm2562_vm4  ;;  %v725_v22 = vld [vmem:[#allocation2 + $0x2c] sm:$0x4]  ;;  %v710_v42 = vrot.slane %v708_v40, 4  ;;  %v709_v43 = vrot.slane %v706_v41, 4  ;;  %v343_v44 = vsel %vm2708_vm8, %v327_v31, %v342_v33  ;;  %1777 = vmatprep.mubr.bf16.mxu0 %v2227_v61  ;;  %2057 = vset.pattern.permute.xlu1 %v2227_v61 }
  0xc8   : > { %v640_v38 = vsel %vm3187_vm10, %v633_v9, %v638_v36  ;;  %vm2731_vm2 = vmor %vm2697_vm14, %vm2686_vm6  ;;  %1638 = vrot.lane.b32.xlu0 %v1635_v28, %s2225_s6  ;;  %vm3191_vm10 = vsmask.f32 3328  ;;  %344 = vst [vmem:[#allocation2 + $0xc] sm:$0x11] %v343_v44  ;;  %vm3194_vm9 = vcmask 1043456   ;;  %1672 = vperm.xlu1 %2057, %v1669_v4  }
  0xc9   : > { %v645_v17 = vsel %vm3188_vm13, %v640_v38, %v644_v23  ;;  %vm2739_vm4 = vmand %vm3118_vm0, %vm3191_vm10  ;;  %v714_v45 = vsel %vm712_vm15, %v708_v40, %v710_v42  ;;  %v711_v46 = vsel %vm3194_vm9, %v709_v43, %v710_v42  ;;  %vm3195_vm14 = vsmask.f32 7424  ;;  %2058 = vset.pattern.permute.xlu0 %v2227_v61  ;;  %v979_v34 = vld [vmem:[#allocation2 + $0x38] sm:$0x2]  ;;  %v976_v37 = vld [vmem:[#allocation2 + $0x30] sm:$0x22] }
  0xca   : > { %646 = vst [vmem:[#allocation2 + $0x24] sm:$0x33] %v645_v17  ;;  %vm3196_vm13 = vcmask 1047559   ;;  %v726_v48 = vsel %vm2686_vm6, %v714_v45, %v725_v22  ;;  %v713_v49 = vsel %vm712_vm15, %v706_v41, %v711_v46  ;;  %vm800_vm10 = vcmask 1022976   ;;  %v796_v50 = vpop.permute.xlu1 %795  ;;  %v794_v51 = vpop.permute.xlu0 %793  ;;  %vm2756_vm0 = vmand %vm671_vm12, %vm3119_vm3  ;;  %v1056_v44 = vld [vmem:[#allocation2 + $0x38] sm:$0x4] }
  0xcb   : > { %vm2747_vm11 = vmand %vm3196_vm13, %vm3195_vm14  ;;  %727 = vst [vmem:[#allocation2 + $0x2c] sm:$0x4] %v726_v48  ;;  %v723_v53 = vsel %vm2731_vm2, %v713_v49, %v722_v14  ;;  %v798_v55 = vrot.slane %v796_v50, 4  ;;  %v797_v56 = vrot.slane %v794_v51, 4  ;;  %vm2226_vm9 = vmmov 0  }
  0xcc   : > { %1972 = vmatprep.mubr.msk.bf16.mxu1 %vm2226_vm9, %v2216_v63  ;;  %724 = vst [vmem:[#allocation2 + $0x24] sm:$0x44] %v723_v53  ;;  %vm2767_vm15 = vmor %vm2747_vm11, %vm2739_vm4  ;;  %vm3203_vm14 = vcmask 1043456   ;;  %vm883_vm11 = vcmask 883712   ;;  %vm3210_vm3 = vsmask.f32 5376 }
  0xcd   : > { %v802_v62 = vsel %vm800_vm10, %v796_v50, %v798_v55  ;;  %v799_v0 = vsel %vm3203_vm14, %v797_v56, %v798_v55  ;;  %vm2779_vm13 = vmor %vm2756_vm0, %vm2668_vm1  ;;  %vm3206_vm0 = vsmask.f32 1280  ;;  %v1053_v46 = vld [vmem:[#allocation2 + $0x30] sm:$0x44]  ;;  %v612_v18 = vld [vmem:[#allocation2 + $0x20] sm:$0xc] }
  0xce   : > { %v3205_v1 = vsel %vm2779_vm13, 4294967295, %v3204_v1  ;;  %v812_v7 = vsel %vm2739_vm4, %v802_v62, %v811_v54  ;;  %v801_v5 = vsel %vm800_vm10, %v794_v51, %v799_v0  ;;  %v879_v30 = vpop.permute.xlu1 %878  ;;  %v877_v11 = vpop.permute.xlu0 %876  ;;  %vm3207_vm10 = vcmask 1041409   ;;  %vm974_vm1 = vmand %vm671_vm12, %vm3210_vm3  ;;  %v1135_v54 = vld [vmem:[#allocation2 + $0x38] sm:$0x8] }
  0xcf   : > { %813 = vst [vmem:[#allocation2 + $0x2c] sm:$0x8] %v812_v7  ;;  %v809_v6 = vsel %vm2767_vm15, %v801_v5, %v808_v58  ;;  %v881_v21 = vrot.slane %v879_v30, 4  ;;  %v880_v8 = vrot.slane %v877_v11, 4  ;;  %vm2793_vm9 = vmand %vm3207_vm10, %vm3206_vm0  ;;  %vm3124_vm0 = vcmask 867328  }
  0xd0   : > { %810 = vst [vmem:[#allocation2 + $0x24] sm:$0x88] %v809_v6  ;;  %vm2810_vm3 = vmor %vm974_vm1, %vm2793_vm9  ;;  %vm3123_vm10 = vcmask 711680   ;;  %v1132_v58 = vld [vmem:[#allocation2 + $0x30] sm:$0x88] }
  0xd1   : > { %v674_v9 = vld [vmem:[#allocation2 + $0x24] sm:$0x22]  ;;  %v885_v20 = vsel %vm883_vm11, %v879_v30, %v881_v21  ;;  %v882_v23 = vsel %vm3203_vm14, %v880_v8, %v881_v21  ;;  %vm3213_vm12 = vmmov %vm3203_vm14  ;;  %v609_v31 = vld [vmem:[#allocation2 + $0x18] sm:$0xcc] }
  0xd2   : > { %v675_v19 = vsel %vm2779_vm13, %v659_v60, %v674_v9  ;;  %v892_v24 = vsel %vm2660_vm7, %v885_v20, %v891_v10  ;;  %v884_v25 = vsel %vm883_vm11, %v877_v11, %v882_v23  ;;  %v965_v27 = vpop.permute.xlu1 %964  ;;  %v963_v28 = vpop.permute.xlu0 %962  ;;  %vm1048_vm11 = vcmask 850944   ;;  %vm3214_vm1 = vmmov %vm3213_vm12  ;;  %v1213_v11 = vld [vmem:[#allocation2 + $0x44] sm:$0x1]  ;;  %v1210_v10 = vld [vmem:[#allocation2 + $0x3c] sm:$0x11] }
  0xd3   : > { %676 = vst [vmem:[#allocation2 + $0x24] sm:$0x22] %v675_v19  ;;  %893 = vst [vmem:[#allocation2 + $0x38] sm:$0x1] %v892_v24  ;;  %v889_v33 = vsel %vm2708_vm8, %v884_v25, %v888_v16  ;;  %v967_v35 = vrot.slane %v965_v27, 4  ;;  %v966_v36 = vrot.slane %v963_v28, 4 }
  0xd4   : > { %890 = vst [vmem:[#allocation2 + $0x30] sm:$0x11] %v889_v33  ;;  %vm3215_vm14 = vmmov %vm3214_vm1  ;;  %v1297_v24 = vld [vmem:[#allocation2 + $0x44] sm:$0x2]  ;;  %vm3227_vm13 = vcmask 1043456  }
  0xd5   : > { %v970_v38 = vsel %vm3124_vm0, %v965_v27, %v967_v35  ;;  %v968_v40 = vsel %vm3213_vm12, %v966_v36, %v967_v35  ;;  %vm3122_vm12 = vcmask 695296  }
  0xd6   : > { %v980_v41 = vsel %vm2793_vm9, %v970_v38, %v979_v34  ;;  %v969_v17 = vsel %vm3124_vm0, %v963_v28, %v968_v40  ;;  %v1044_v22 = vpop.permute.xlu1 %1043  ;;  %v1042_v42 = vpop.permute.xlu0 %1041  ;;  %v1294_v28 = vld [vmem:[#allocation2 + $0x3c] sm:$0x22] }
  0xd7   : > { %981 = vst [vmem:[#allocation2 + $0x38] sm:$0x2] %v980_v41  ;;  %v977_v43 = vsel %vm2810_vm3, %v969_v17, %v976_v37  ;;  %v1046_v14 = vrot.slane %v1044_v22, 4  ;;  %v1045_v45 = vrot.slane %v1042_v42, 4  ;;  %v1373_v41 = vld [vmem:[#allocation2 + $0x44] sm:$0x4] }
  0xd8   : > { %978 = vst [vmem:[#allocation2 + $0x30] sm:$0x22] %v977_v43 }
  0xd9   : > { %v1050_v47 = vsel %vm1048_vm11, %v1044_v22, %v1046_v14  ;;  %v1047_v48 = vsel %vm3214_vm1, %v1045_v45, %v1046_v14 }
  0xda   : > { %v1057_v49 = vsel %vm2686_vm6, %v1050_v47, %v1056_v44  ;;  %v1049_v50 = vsel %vm1048_vm11, %v1042_v42, %v1047_v48  ;;  %v1124_v51 = vpop.permute.xlu1 %1123  ;;  %v1122_v52 = vpop.permute.xlu0 %1121  ;;  %vm3216_vm11 = vmmov %vm3214_vm1  ;;  %vm1289_vm1 = vcmask 556032   ;;  %v1370_v42 = vld [vmem:[#allocation2 + $0x3c] sm:$0x44] }
  0xdb   : > { %1058 = vst [vmem:[#allocation2 + $0x38] sm:$0x4] %v1057_v49  ;;  %v1054_v53 = vsel %vm2731_vm2, %v1049_v50, %v1053_v46  ;;  %v1126_v55 = vrot.slane %v1124_v51, 4  ;;  %v1125_v56 = vrot.slane %v1122_v52, 4  ;;  %v1452_v49 = vld [vmem:[#allocation2 + $0x44] sm:$0x8] }
  0xdc   : > { %1055 = vst [vmem:[#allocation2 + $0x30] sm:$0x44] %v1054_v53 }
  0xdd   : > { %v1129_v60 = vsel %vm3123_vm10, %v1124_v51, %v1126_v55  ;;  %v1127_v61 = vsel %vm3215_vm14, %v1125_v56, %v1126_v55  ;;  %vm3217_vm14 = vmmov %vm3216_vm11 }
  0xde   : > { %v1136_v62 = vsel %vm2739_vm4, %v1129_v60, %v1135_v54  ;;  %v1128_v0 = vsel %vm3123_vm10, %v1122_v52, %v1127_v61  ;;  %v1202_v7 = vpop.permute.xlu1 %1201  ;;  %v1200_v5 = vpop.permute.xlu0 %1199  ;;  %vm3220_vm10 = vcmask 1042433  }
  0xdf   : > { %1137 = vst [vmem:[#allocation2 + $0x38] sm:$0x8] %v1136_v62  ;;  %v1133_v30 = vsel %vm2767_vm15, %v1128_v0, %v1132_v58  ;;  %v1204_v4 = vrot.slane %v1202_v7, 4  ;;  %v1203_v6 = vrot.slane %v1200_v5, 4 }
  0xe0   : > { %1134 = vst [vmem:[#allocation2 + $0x30] sm:$0x88] %v1133_v30 }
  0xe1   : > { %v1207_v21 = vsel %vm3122_vm12, %v1202_v7, %v1204_v4  ;;  %v1205_v8 = vsel %vm3216_vm11, %v1203_v6, %v1204_v4  ;;  %vm3125_vm11 = vcmask 539648   ;;  %v283_v4 = vld [vmem:[#allocation2] sm:$0x66] }
  0xe2   : > { %v1214_v9 = vsel %vm2660_vm7, %v1207_v21, %v1213_v11  ;;  %v1206_v16 = vsel %vm3122_vm12, %v1200_v5, %v1205_v8  ;;  %v1285_v19 = vpop.permute.xlu1 %1284  ;;  %v1283_v20 = vpop.permute.xlu0 %1282  ;;  %vm3218_vm12 = vmmov %vm3217_vm14  ;;  %v286_v5 = vld [vmem:[#allocation2 + $0x8] sm:$0x6] }
  0xe3   : > { %1215 = vst [vmem:[#allocation2 + $0x44] sm:$0x1] %v1214_v9  ;;  %v1211_v23 = vsel %vm2708_vm8, %v1206_v16, %v1210_v10  ;;  %v1287_v25 = vrot.slane %v1285_v19, 4  ;;  %v1286_v27 = vrot.slane %v1283_v20, 4 }
  0xe4   : > { %1212 = vst [vmem:[#allocation2 + $0x3c] sm:$0x11] %v1211_v23 }
  0xe5   : > { %v1291_v33 = vsel %vm1289_vm1, %v1285_v19, %v1287_v25  ;;  %v1288_v34 = vsel %vm3217_vm14, %v1286_v27, %v1287_v25  ;;  %vm3219_vm14 = vsmask.f32 7942  ;;  %v399_v19 = vld [vmem:[#allocation2 + $0x14] sm:$0x3]  ;;  %v396_v27 = vld [vmem:[#allocation2 + $0xc] sm:$0x33] }
  0xe6   : > { %v1298_v35 = vsel %vm2793_vm9, %v1291_v33, %v1297_v24  ;;  %v1290_v36 = vsel %vm1289_vm1, %v1283_v20, %v1288_v34  ;;  %v1362_v37 = vpop.permute.xlu1 %1361  ;;  %v1360_v38 = vpop.permute.xlu0 %1359  ;;  %vm1444_vm1 = vcmask 523264   ;;  %vm2854_vm0 = vmand %vm3220_vm10, %vm3219_vm14  ;;  %vm3228_vm10 = vsmask.f32 7938 }
  0xe7   : > { %1299 = vst [vmem:[#allocation2 + $0x44] sm:$0x2] %v1298_v35  ;;  %v1295_v40 = vsel %vm2810_vm3, %v1290_v36, %v1294_v28  ;;  %v1364_v17 = vrot.slane %v1362_v37, 4  ;;  %v1363_v22 = vrot.slane %v1360_v38, 4 }
  0xe8   : > { %1296 = vst [vmem:[#allocation2 + $0x3c] sm:$0x22] %v1295_v40 }
  0xe9   : > { %v1367_v43 = vsel %vm3125_vm11, %v1362_v37, %v1364_v17  ;;  %v1365_v44 = vsel %vm3218_vm12, %v1363_v22, %v1364_v17  ;;  %vm3224_vm12 = vcmask 1046533  }
  0xea   : > { %v1374_v14 = vsel %vm2686_vm6, %v1367_v43, %v1373_v41  ;;  %v1366_v45 = vsel %vm3125_vm11, %v1360_v38, %v1365_v44  ;;  %v1440_v46 = vpop.permute.xlu1 %1439  ;;  %v1438_v47 = vpop.permute.xlu0 %1437  ;;  %vm3223_vm6 = vsmask.f32 7958  ;;  %v512_v43 = vld [vmem:[#allocation2 + $0x14] sm:$0x8] }
  0xeb   : > { %1375 = vst [vmem:[#allocation2 + $0x44] sm:$0x4] %v1374_v14  ;;  %v1371_v48 = vsel %vm2731_vm2, %v1366_v45, %v1370_v42  ;;  %v1442_v50 = vrot.slane %v1440_v46, 4  ;;  %v1441_v51 = vrot.slane %v1438_v47, 4  ;;  %vm2860_vm11 = vmand %vm3224_vm12, %vm3223_vm6  ;;  %vm3235_vm6 = vcmask 1045508  }
  0xec   : > { %1372 = vst [vmem:[#allocation2 + $0x3c] sm:$0x44] %v1371_v48  ;;  %vm282_vm2 = vmor %vm2860_vm11, %vm2854_vm0 }
  0xed   : > { %v1446_v54 = vsel %vm1444_vm1, %v1440_v46, %v1442_v50  ;;  %v1443_v39 = vsel %vm3227_vm13, %v1441_v51, %v1442_v50  ;;  %vm3229_vm13 = vcmask 1041408   ;;  %v509_v46 = vld [vmem:[#allocation2 + $0xc] sm:$0x88] }
  0xee   : > { %v1453_v55 = vsel %vm2739_vm4, %v1446_v54, %v1452_v49  ;;  %v1445_v56 = vsel %vm1444_vm1, %v1438_v47, %v1443_v39  ;;  %v267_v58 = vpop.permute.xlu1 %266  ;;  %v265_v60 = vpop.permute.xlu0 %264  ;;  %vm2875_vm14 = vmand %vm3229_vm13, %vm3228_vm10  ;;  %vm3232_vm4 = vcmask 867328   ;;  %vm3233_vm1 = vcmask 1043456   ;;  %v1532_v39 = vld [vmem:[#allocation2 + $0x50] sm:$0x1] }
  0xef   : > { %1454 = vst [vmem:[#allocation2 + $0x44] sm:$0x8] %v1453_v55  ;;  %v1450_v61 = vsel %vm2767_vm15, %v1445_v56, %v1449_v15  ;;  %v269_v62 = vrot.slane %v267_v58, 4  ;;  %v268_v0 = vrot.slane %v265_v60, 4  ;;  %vm3234_vm15 = vsmask.f32 7954  ;;  %vm3238_vm11 = vmmov %vm3232_vm4 }
  0xf0   : > { %1451 = vst [vmem:[#allocation2 + $0x3c] sm:$0x88] %v1450_v61  ;;  %vm2883_vm12 = vmand %vm3235_vm6, %vm3234_vm15  ;;  %vm503_vm10 = vsmask.f32 7950  ;;  %vm506_vm13 = vsmask.f32 7966 }
  0xf1   : > { %v273_v7 = vsel %vm3232_vm4, %v267_v58, %v269_v62  ;;  %v270_v57 = vsel %vm3233_vm1, %v268_v0, %v269_v62  ;;  %vm395_vm4 = vmor %vm2883_vm12, %vm2875_vm14  ;;  %vm3239_vm1 = vcmask 711680   ;;  %vm3241_vm15 = vcmask 1043459   ;;  %v1529_v56 = vld [vmem:[#allocation2 + $0x48] sm:$0x11] }
  0xf2   : > { %v287_v11 = vsel %vm2854_vm0, %v273_v7, %v286_v5  ;;  %v272_v6 = vsel %vm3238_vm11, %v265_v60, %v270_v57  ;;  %v382_v10 = vpop.permute.xlu1 %381  ;;  %v380_v21 = vpop.permute.xlu0 %379  ;;  %vm3240_vm0 = vcmask 1043456   ;;  %vm2897_vm6 = vmand %vm3241_vm15, %vm503_vm10  ;;  %vm3245_vm11 = vcmask 1047559   ;;  %v1616_v57 = vld [vmem:[#allocation2 + $0x50] sm:$0x2] }
  0xf3   : > { %288 = vst [vmem:[#allocation2 + $0x8] sm:$0x6] %v287_v11  ;;  %v284_v8 = vsel %vm282_vm2, %v272_v6, %v283_v4  ;;  %v384_v9 = vrot.slane %v382_v10, 4  ;;  %v383_v16 = vrot.slane %v380_v21, 4  ;;  %vm3244_vm2 = vmmov %vm3239_vm1  ;;  %v1613_v4 = vld [vmem:[#allocation2 + $0x48] sm:$0x22] }
  0xf4   : > { %285 = vst [vmem:[#allocation2] sm:$0x66] %v284_v8  ;;  %vm507_vm12 = vmand %vm3245_vm11, %vm506_vm13  ;;  %v932_v11 = vld [vmem:[#allocation2 + $0x38] sm:$0x1] }
  0xf5   : > { %v388_v20 = vsel %vm3239_vm1, %v382_v10, %v384_v9  ;;  %v385_v23 = vsel %vm3240_vm0, %v383_v16, %v384_v9  ;;  %vm2907_vm10 = vmor %vm507_vm12, %vm2897_vm6  ;;  %vm1608_vm12 = vcmask 367616  }
  0xf6   : > { %v400_v25 = vsel %vm2875_vm14, %v388_v20, %v399_v19  ;;  %v387_v28 = vsel %vm3244_vm2, %v380_v21, %v385_v23  ;;  %v2054_v33 = vpop.permute.xlu0 %2053  ;;  %v311_v34 = vpop.permute.xlu1 %310  ;;  %vm3248_vm14 = vcmask 695296   ;;  %vm3249_vm13 = vmmov %vm3240_vm0  ;;  %vm1524_vm2 = vcmask 384000  }
  0xf7   : > { %401 = vst [vmem:[#allocation2 + $0x14] sm:$0x3] %v400_v25  ;;  %v397_v35 = vsel %vm395_vm4, %v387_v28, %v396_v27  ;;  %v2056_v36 = vunpack.i.h.bf16 %v2054_v33  ;;  %v2055_v37 = vunpack.i.l.bf16 %v2054_v33  ;;  %v318_v41 = vrot.slane %v311_v34, 4  ;;  %vm3250_vm4 = vmmov %vm3248_vm14 }
  0xf8   : > { %398 = vst [vmem:[#allocation2 + $0xc] sm:$0x33] %v397_v35  ;;  %vm3251_vm1 = vmmov %vm3240_vm0  ;;  %vm3252_vm0 = vcmask 859136  }
  0xf9   : > { %v488_v38 = vrot.slane %v2056_v36, 4  ;;  %v487_v40 = vrot.slane %v2055_v37, 4  ;;  %vm3253_vm15 = vmmov %vm3252_vm0 }
  0xfa   : > { %v313_v22 = vpop.permute.xlu0 %312  ;;  %v1518_v42 = vpop.permute.xlu1 %1517  ;;  %vm3254_vm11 = vmmov %vm3251_vm1 }
  0xfb   : > { %v494_v44 = vsel %vm3248_vm14, %v2056_v36, %v488_v38  ;;  %v491_v14 = vsel %vm3249_vm13, %v487_v40, %v488_v38  ;;  %v319_v45 = vrot.slane %v313_v22, 4  ;;  %v1521_v52 = vrot.slane %v1518_v42, 4 }
  0xfc   : > { %v513_v47 = vsel %vm2897_vm6, %v494_v44, %v512_v43  ;;  %v493_v48 = vsel %vm3250_vm4, %v2055_v37, %v491_v14  ;;  %vm3255_vm14 = vsmask.f32 7962  ;;  %vm3256_vm13 = vcmask 1047558   ;;  %v762_v14 = vld [vmem:[#allocation2 + $0x24] sm:$0x44] }
  0xfd   : > { %514 = vst [vmem:[#allocation2 + $0x14] sm:$0x8] %v513_v47  ;;  %v510_v49 = vsel %vm2907_vm10, %v493_v48, %v509_v46  ;;  %v322_v50 = vsel %vm3251_vm1, %v318_v41, %v319_v45  ;;  %v325_v51 = vsel %vm3252_vm0, %v313_v22, %v319_v45  ;;  %vm2928_vm4 = vmand %vm3256_vm13, %vm3255_vm14  ;;  %vm3259_vm1 = vsmask.f32 7946  ;;  %v765_v22 = vld [vmem:[#allocation2 + $0x2c] sm:$0x4] }
  0xfe   : > { %511 = vst [vmem:[#allocation2 + $0xc] sm:$0x88] %v510_v49  ;;  %v324_v15 = vsel %vm3253_vm15, %v311_v34, %v322_v50  ;;  %334 = vst [vmem:[#allocation2 + $0x8] sm:$0x8] %v325_v51  ;;  %v1520_v53 = vpop.permute.xlu0 %1519  ;;  %v1602_v54 = vpop.permute.xlu1 %1601  ;;  %vm3260_vm0 = vcmask 1043458   ;;  %vm838_vm14 = vcmask 1014784   ;;  %vm3268_vm13 = vnez %v3138_v13 }
  0xff   : > { %333 = vst [vmem:[#allocation2] sm:$0x88] %v324_v15  ;;  %v1522_v55 = vrot.slane %v1520_v53, 4  ;;  %v1605_v61 = vrot.slane %v1602_v54, 4  ;;  %vm3263_vm15 = vmmov %vm3254_vm11  ;;  %v846_v51 = vld [vmem:[#allocation2 + $0x2c] sm:$0x8] }
 0x101   : > { %v1523_v58 = vsel %vm3254_vm11, %v1521_v52, %v1522_v55  ;;  %v1526_v60 = vsel %vm1524_vm2, %v1520_v53, %v1522_v55 }
 0x102   : > { %v1525_v62 = vsel %vm1524_vm2, %v1518_v42, %v1523_v58  ;;  %v1533_v0 = vsel %vm2660_vm7, %v1526_v60, %v1532_v39  ;;  %v1604_v3 = vpop.permute.xlu0 %1603  ;;  %v593_v7 = vpop.permute.xlu1 %592  ;;  %vm2934_vm7 = vmand %vm3260_vm0, %vm3259_vm1  ;;  %vm3265_vm2 = vcmask 539648   ;;  %vm3271_vm0 = vcmask 695296  }
 0x103   : > { %v1530_v5 = vsel %vm2708_vm8, %v1525_v62, %v1529_v56  ;;  %1534 = vst [vmem:[#allocation2 + $0x50] sm:$0x1] %v1533_v0  ;;  %v1606_v30 = vrot.slane %v1604_v3, 4  ;;  %v596_v10 = vrot.slane %v593_v7, 4  ;;  %vm608_vm8 = vmor %vm2928_vm4, %vm2934_vm7 }
 0x104   : > { %1531 = vst [vmem:[#allocation2 + $0x48] sm:$0x11] %v1530_v5 }
 0x105   : > { %v1607_v29 = vsel %vm3263_vm15, %v1605_v61, %v1606_v30  ;;  %v1610_v6 = vsel %vm1608_vm12, %v1604_v3, %v1606_v30  ;;  %v2086_v21 = vld [vmem:[#allocation2 + $0x8] ss:$12 sps:$4 sm:$0xff]  }
 0x106   : > { %v1609_v8 = vsel %vm1608_vm12, %v1602_v54, %v1607_v29  ;;  %v1617_v9 = vsel %vm2793_vm9, %v1610_v6, %v1616_v57  ;;  %v595_v16 = vpop.permute.xlu0 %594  ;;  %v2087_v19 = vld [vmem:[#allocation2 + $0x4] ss:$12 sps:$4 sm:$0xff]   ;;  %v748_v20 = vpop.permute.xlu1 %747  ;;  %v2089_v23 = vld [vmem:[#allocation2] ss:$12 sps:$4 sm:$0xff]   ;;  %1965 = vmatpush3.bf16.msra.mxu1 %v2086_v21  ;;  %vm3264_vm9 = vmmov %vm3254_vm11  ;;  %vm754_vm11 = vcmask 1031168  }
 0x107   : > { %v1614_v25 = vsel %vm2810_vm3, %v1609_v8, %v1613_v4  ;;  %1618 = vst [vmem:[#allocation2 + $0x50] sm:$0x2] %v1617_v9  ;;  %v597_v27 = vrot.slane %v595_v16, 4  ;;  %1745 = vmatprep.subr.bf16.mxu0 %v2087_v19  ;;  %1966 = vmatprep.subr.bf16.mxu1 %v2216_v63  ;;  %v751_v34 = vrot.slane %v748_v20, 4  ;;  %vm3266_vm3 = vmmov %vm3265_vm2  ;;  %v843_v54 = vld [vmem:[#allocation2 + $0x24] sm:$0x88] }
 0x108   : > { %1615 = vst [vmem:[#allocation2 + $0x48] sm:$0x22] %v1614_v25  ;;  %1746 = vmatpush1.bf16.msra.mxu0 %v2089_v23  ;;  %vm3267_vm12 = vmmov %vm3264_vm9  ;;  %v929_v6 = vld [vmem:[#allocation2 + $0x30] sm:$0x11]  ;;  %v1013_v23 = vld [vmem:[#allocation2 + $0x38] sm:$0x2] }
 0x109   : > { %v598_v28 = vsel %vm3264_vm9, %v596_v10, %v597_v27  ;;  %v601_v33 = vsel %vm3265_vm2, %v595_v16, %v597_v27  ;;  %vm3269_vm4 = vmmov %vm3264_vm9  ;;  %vm3276_vm2 = vnez %v3140_v26 }
 0x10a   : > { %v600_v35 = vsel %vm3266_vm3, %v593_v7, %v598_v28  ;;  %v613_v36 = vsel %vm2934_vm7, %v601_v33, %v612_v18  ;;  %v750_v37 = vpop.permute.xlu0 %749  ;;  %v832_v38 = vpop.permute.xlu1 %831  ;;  %vm3270_vm1 = vmmov %vm3269_vm4  ;;  %vm3277_vm3 = vnez %v3142_v32 }
 0x10b   : > { %v610_v40 = vsel %vm608_vm8, %v600_v35, %v609_v31  ;;  %614 = vst [vmem:[#allocation2 + $0x20] sm:$0xc] %v613_v36  ;;  %v752_v41 = vrot.slane %v750_v37, 4  ;;  %v835_v44 = vrot.slane %v832_v38, 4  ;;  %vm3272_vm7 = vmmov %vm3271_vm0  ;;  %vm3274_vm8 = vcmask 875520  }
 0x10c   : > { %611 = vst [vmem:[#allocation2 + $0x18] sm:$0xcc] %v610_v40  ;;  %vm3273_vm15 = vmmov %vm3270_vm1 }
 0x10d   : > { %v753_v42 = vsel %vm3267_vm12, %v751_v34, %v752_v41  ;;  %v756_v43 = vsel %vm754_vm11, %v750_v37, %v752_v41  ;;  %vm3275_vm9 = vmmov %vm3274_vm8  ;;  %vm3279_vm12 = vcmask 859136   ;;  %v1093_v41 = vld [vmem:[#allocation2 + $0x38] sm:$0x4] }
 0x10e   : > { %v755_v45 = vsel %vm754_vm11, %v748_v20, %v753_v42  ;;  %v766_v46 = vsel %vm2488_vm5, %v756_v43, %v765_v22  ;;  %v834_v47 = vpop.permute.xlu0 %833  ;;  %v484_v48 = vpop.permute.xlu1 %483  ;;  %v1010_v20 = vld [vmem:[#allocation2 + $0x30] sm:$0x22]  ;;  %vm3278_vm11 = vmmov %vm3270_vm1 }
 0x10f   : > { %v763_v49 = vsel %vm3268_vm13, %v755_v45, %v762_v14  ;;  %767 = vst [vmem:[#allocation2 + $0x2c] sm:$0x4] %v766_v46  ;;  %v836_v50 = vrot.slane %v834_v47, 4  ;;  %v489_v53 = vrot.slane %v484_v48, 4 }
 0x110   : > { %764 = vst [vmem:[#allocation2 + $0x24] sm:$0x44] %v763_v49 }
 0x111   : > { %v837_v52 = vsel %vm3269_vm4, %v835_v44, %v836_v50  ;;  %v840_v15 = vsel %vm838_vm14, %v834_v47, %v836_v50  ;;  %vm3281_vm4 = vnez %v3167_v2  ;;  %v1090_v44 = vld [vmem:[#allocation2 + $0x30] sm:$0x44]  ;;  %v1169_v50 = vld [vmem:[#allocation2 + $0x38] sm:$0x8] }
 0x112   : > { %v839_v39 = vsel %vm838_vm14, %v832_v38, %v837_v52  ;;  %v847_v55 = vsel %vm2897_vm6, %v840_v15, %v846_v51  ;;  %v486_v56 = vpop.permute.xlu0 %485  ;;  %v916_v58 = vpop.permute.xlu1 %915  ;;  %vm3280_vm14 = vmmov %vm3279_vm12 }
 0x113   : > { %v844_v60 = vsel %vm2907_vm10, %v839_v39, %v843_v54  ;;  %848 = vst [vmem:[#allocation2 + $0x2c] sm:$0x8] %v847_v55  ;;  %v490_v61 = vrot.slane %v486_v56, 4  ;;  %v919_v3 = vrot.slane %v916_v58, 4 }
 0x114   : > { %845 = vst [vmem:[#allocation2 + $0x24] sm:$0x88] %v844_v60 }
 0x115   : > { %v495_v62 = vsel %vm3270_vm1, %v489_v53, %v490_v61  ;;  %v497_v0 = vsel %vm3271_vm0, %v486_v56, %v490_v61  ;;  %vm1085_vm1 = vcmask 719872   ;;  %vm3282_vm0 = vnez %v3205_v1  ;;  %v1166_v53 = vld [vmem:[#allocation2 + $0x30] sm:$0x88]  ;;  %v1252_v61 = vld [vmem:[#allocation2 + $0x44] sm:$0x1] }
 0x116   : > { %v496_v7 = vsel %vm3272_vm7, %v484_v48, %v495_v62  ;;  %516 = vst [vmem:[#allocation2 + $0x20] sm:$0x1] %v497_v0  ;;  %v918_v5 = vpop.permute.xlu0 %917  ;;  %v1000_v57 = vpop.permute.xlu1 %999  ;;  %vm3283_vm7 = vmmov %vm3278_vm11  ;;  %v1654_v1 = vld [vmem:[%s3086_s1] sm:$0xf] }
 0x117   : > { %515 = vst [vmem:[#allocation2 + $0x18] sm:$0x11] %v496_v7  ;;  %v920_v30 = vrot.slane %v918_v5, 4  ;;  %v1003_v29 = vrot.slane %v1000_v57, 4  ;;  %v1249_v7 = vld [vmem:[#allocation2 + $0x3c] sm:$0x11] }
 0x119   : > { %v921_v4 = vsel %vm3273_vm15, %v919_v3, %v920_v30  ;;  %v923_v59 = vsel %vm3274_vm8, %v918_v5, %v920_v30  ;;  %vm3284_vm15 = vmmov %vm3283_vm7  ;;  %vm3285_vm8 = vcmask 703488  }
 0x11a   : > { %v922_v10 = vsel %vm3275_vm9, %v916_v58, %v921_v4  ;;  %v933_v21 = vsel %vm3276_vm2, %v923_v59, %v932_v11  ;;  %v1002_v8 = vpop.permute.xlu0 %1001  ;;  %v1079_v9 = vpop.permute.xlu1 %1078  ;;  %vm3286_vm9 = vmmov %vm3285_vm8 }
 0x11b   : > { %v930_v16 = vsel %vm3277_vm3, %v922_v10, %v929_v6  ;;  %934 = vst [vmem:[#allocation2 + $0x38] sm:$0x1] %v933_v21  ;;  %v1004_v19 = vrot.slane %v1002_v8, 4  ;;  %v1082_v18 = vrot.slane %v1079_v9, 4 }
 0x11c   : > { %931 = vst [vmem:[#allocation2 + $0x30] sm:$0x11] %v930_v16 }
 0x11d   : > { %v1005_v25 = vsel %vm3278_vm11, %v1003_v29, %v1004_v19  ;;  %v1007_v27 = vsel %vm3279_vm12, %v1002_v8, %v1004_v19  ;;  %v2090_v28 = vld [vmem:[#allocation2 + $0x20] ss:$12 sps:$4 sm:$0xff]   ;;  %vm1244_vm11 = vcmask 687104   ;;  %vm3287_vm12 = vmmov %vm3283_vm7  ;;  %v1331_v29 = vld [vmem:[#allocation2 + $0x44] sm:$0x2] }
 0x11e   : > { %v1006_v33 = vsel %vm3280_vm14, %v1000_v57, %v1005_v25  ;;  %v1014_v34 = vsel %vm3281_vm4, %v1007_v27, %v1013_v23  ;;  %v1081_v31 = vpop.permute.xlu0 %1080  ;;  %v2091_v35 = vld [vmem:[#allocation2 + $0x1c] ss:$12 sps:$4 sm:$0xff]   ;;  %v1156_v36 = vpop.permute.xlu1 %1155  ;;  %v2093_v37 = vld [vmem:[#allocation2 + $0x18] ss:$12 sps:$4 sm:$0xff]   ;;  %1967 = vmatpush3.bf16.msra.mxu1 %v2090_v28  ;;  %vm3288_vm14 = vmmov %vm3283_vm7 }
 0x11f   : > { %v1011_v38 = vsel %vm3282_vm0, %v1006_v33, %v1010_v20  ;;  %1015 = vst [vmem:[#allocation2 + $0x38] sm:$0x2] %v1014_v34  ;;  %v1083_v40 = vrot.slane %v1081_v31, 4  ;;  %1747 = vmatprep.subr.bf16.mxu0 %v2091_v35  ;;  %1968 = vmatprep.subr.bf16.mxu1 %v2216_v63  ;;  %v1159_v43 = vrot.slane %v1156_v36, 4  ;;  %v1328_v8 = vld [vmem:[#allocation2 + $0x3c] sm:$0x22] }
 0x120   : > { %1012 = vst [vmem:[#allocation2 + $0x30] sm:$0x22] %v1011_v38  ;;  %1748 = vmatpush1.bf16.msra.mxu0 %v2093_v37  ;;  %v1409_v27 = vld [vmem:[#allocation2 + $0x44] sm:$0x4]  ;;  %v1406_v34 = vld [vmem:[#allocation2 + $0x3c] sm:$0x44] }
 0x121   : > { %v1084_v22 = vsel %vm3283_vm7, %v1082_v18, %v1083_v40  ;;  %v1087_v42 = vsel %vm1085_vm1, %v1081_v31, %v1083_v40 }
 0x122   : > { %v1086_v14 = vsel %vm1085_vm1, %v1079_v9, %v1084_v22  ;;  %v1094_v45 = vsel %vm2488_vm5, %v1087_v42, %v1093_v41  ;;  %v1158_v46 = vpop.permute.xlu0 %1157  ;;  %v1238_v47 = vpop.permute.xlu1 %1237  ;;  %vm3289_vm1 = vcmask 547840   ;;  %v1487_v41 = vld [vmem:[#allocation2 + $0x44] sm:$0x8] }
 0x123   : > { %v1091_v48 = vsel %vm3268_vm13, %v1086_v14, %v1090_v44  ;;  %1095 = vst [vmem:[#allocation2 + $0x38] sm:$0x4] %v1094_v45  ;;  %v1160_v49 = vrot.slane %v1158_v46, 4  ;;  %v1241_v15 = vrot.slane %v1238_v47, 4  ;;  %vm3290_vm7 = vmmov %vm3289_vm1  ;;  %v1484_v44 = vld [vmem:[#allocation2 + $0x3c] sm:$0x88] }
 0x124   : > { %1092 = vst [vmem:[#allocation2 + $0x30] sm:$0x44] %v1091_v48  ;;  %v1571_v48 = vld [vmem:[#allocation2 + $0x50] sm:$0x1] }
 0x125   : > { %v1161_v51 = vsel %vm3284_vm15, %v1159_v43, %v1160_v49  ;;  %v1163_v52 = vsel %vm3285_vm8, %v1158_v46, %v1160_v49  ;;  %vm3291_vm15 = vmmov %vm3287_vm12  ;;  %vm3292_vm8 = vcmask 531456  }
 0x126   : > { %v1162_v54 = vsel %vm3286_vm9, %v1156_v36, %v1161_v51  ;;  %v1170_v39 = vsel %vm2897_vm6, %v1163_v52, %v1169_v50  ;;  %v1240_v55 = vpop.permute.xlu0 %1239  ;;  %v1318_v56 = vpop.permute.xlu1 %1317  ;;  %vm3293_vm9 = vmmov %vm3292_vm8  ;;  %v1568_v52 = vld [vmem:[#allocation2 + $0x48] sm:$0x11] }
 0x127   : > { %v1167_v58 = vsel %vm2907_vm10, %v1162_v54, %v1166_v53  ;;  %1171 = vst [vmem:[#allocation2 + $0x38] sm:$0x8] %v1170_v39  ;;  %v1242_v60 = vrot.slane %v1240_v55, 4  ;;  %v1321_v3 = vrot.slane %v1318_v56, 4  ;;  %v1651_v39 = vld [vmem:[#allocation2 + $0x50] sm:$0x2] }
 0x128   : > { %1168 = vst [vmem:[#allocation2 + $0x30] sm:$0x88] %v1167_v58  ;;  %v1648_v58 = vld [vmem:[#allocation2 + $0x48] sm:$0x22] }
 0x129   : > { %v1243_v62 = vsel %vm3287_vm12, %v1241_v15, %v1242_v60  ;;  %v1246_v0 = vsel %vm1244_vm11, %v1240_v55, %v1242_v60 }
 0x12a   : > { %v1245_v5 = vsel %vm1244_vm11, %v1238_v47, %v1243_v62  ;;  %v1253_v57 = vsel %vm3276_vm2, %v1246_v0, %v1252_v61  ;;  %v1320_v30 = vpop.permute.xlu0 %1319  ;;  %v1396_v11 = vpop.permute.xlu1 %1395  ;;  %vm1479_vm11 = vcmask 392192  }
 0x12b   : > { %v1250_v4 = vsel %vm3277_vm3, %v1245_v5, %v1249_v7  ;;  %1254 = vst [vmem:[#allocation2 + $0x44] sm:$0x1] %v1253_v57  ;;  %v1322_v59 = vrot.slane %v1320_v30, 4  ;;  %v1399_v21 = vrot.slane %v1396_v11, 4 }
 0x12c   : > { %1251 = vst [vmem:[#allocation2 + $0x3c] sm:$0x11] %v1250_v4 }
 0x12d   : > { %v1323_v6 = vsel %vm3288_vm14, %v1321_v3, %v1322_v59  ;;  %v1325_v10 = vsel %vm3289_vm1, %v1320_v30, %v1322_v59 }
 0x12e   : > { %v1324_v9 = vsel %vm3290_vm7, %v1318_v56, %v1323_v6  ;;  %v1332_v16 = vsel %vm3281_vm4, %v1325_v10, %v1331_v29  ;;  %v1398_v19 = vpop.permute.xlu0 %1397  ;;  %v1473_v20 = vpop.permute.xlu1 %1472 }
 0x12f   : > { %v1329_v23 = vsel %vm3282_vm0, %v1324_v9, %v1328_v8  ;;  %1333 = vst [vmem:[#allocation2 + $0x44] sm:$0x2] %v1332_v16  ;;  %v1400_v25 = vrot.slane %v1398_v19, 4  ;;  %v1476_v33 = vrot.slane %v1473_v20, 4 }
 0x130   : > { %1330 = vst [vmem:[#allocation2 + $0x3c] sm:$0x22] %v1329_v23 }
 0x131   : > { %v1401_v18 = vsel %vm3291_vm15, %v1399_v21, %v1400_v25  ;;  %v1403_v28 = vsel %vm3292_vm8, %v1398_v19, %v1400_v25 }
 0x132   : > { %v1402_v31 = vsel %vm3293_vm9, %v1396_v11, %v1401_v18  ;;  %v1410_v35 = vsel %vm2488_vm5, %v1403_v28, %v1409_v27  ;;  %v1475_v36 = vpop.permute.xlu0 %1474  ;;  %v1557_v37 = vpop.permute.xlu1 %1556  ;;  %vm1563_vm5 = vcmask 375808  }
 0x133   : > { %v1407_v38 = vsel %vm3268_vm13, %v1402_v31, %v1406_v34  ;;  %1411 = vst [vmem:[#allocation2 + $0x44] sm:$0x4] %v1410_v35  ;;  %v1477_v40 = vrot.slane %v1475_v36, 4  ;;  %v1560_v43 = vrot.slane %v1557_v37, 4  ;;  %vm3294_vm13 = vmmov %vm3287_vm12 }
 0x134   : > { %1408 = vst [vmem:[#allocation2 + $0x3c] sm:$0x44] %v1407_v38 }
 0x135   : > { %v1478_v22 = vsel %vm3287_vm12, %v1476_v33, %v1477_v40  ;;  %v1481_v42 = vsel %vm1479_vm11, %v1475_v36, %v1477_v40 }
 0x136   : > { %v1480_v14 = vsel %vm1479_vm11, %v1473_v20, %v1478_v22  ;;  %v1488_v12 = vsel %vm2897_vm6, %v1481_v42, %v1487_v41  ;;  %v1559_v45 = vpop.permute.xlu0 %1558  ;;  %v1637_v46 = vpop.permute.xlu1 %1636  ;;  %vm1643_vm6 = vcmask 359424  }
 0x137   : > { %v1485_v13 = vsel %vm2907_vm10, %v1480_v14, %v1484_v44  ;;  %1489 = vst [vmem:[#allocation2 + $0x44] sm:$0x8] %v1488_v12  ;;  %v1561_v47 = vrot.slane %v1559_v45, 4  ;;  %v1640_v51 = vrot.slane %v1637_v46, 4  ;;  %vm3295_vm10 = vmmov %vm3287_vm12 }
 0x138   : > { %1486 = vst [vmem:[#allocation2 + $0x3c] sm:$0x88] %v1485_v13 }
 0x139   : > { %v1562_v49 = vsel %vm3294_vm13, %v1560_v43, %v1561_v47  ;;  %v1565_v50 = vsel %vm1563_vm5, %v1559_v45, %v1561_v47 }
 0x13a   : > { %v1564_v15 = vsel %vm1563_vm5, %v1557_v37, %v1562_v49  ;;  %v1572_v24 = vsel %vm3276_vm2, %v1565_v50, %v1571_v48  ;;  %v1639_v53 = vpop.permute.xlu0 %1638  ;;  %vm3296_vm2 = vcmask 1041408  }
 0x13b   : > { %v1569_v54 = vsel %vm3277_vm3, %v1564_v15, %v1568_v52  ;;  %1573 = vst [vmem:[#allocation2 + $0x50] sm:$0x1] %v1572_v24  ;;  %v1641_v17 = vrot.slane %v1639_v53, 4  ;;  %vm1731_vm3 = vcmask 424960  }
 0x13c   : > { %1570 = vst [vmem:[#allocation2 + $0x48] sm:$0x11] %v1569_v54 }
 0x13d   : > { %v1642_v55 = vsel %vm3295_vm10, %v1640_v51, %v1641_v17  ;;  %v1645_v56 = vsel %vm1643_vm6, %v1639_v53, %v1641_v17 }
 0x13e   : > { %v1644_v60 = vsel %vm1643_vm6, %v1637_v46, %v1642_v55  ;;  %v1652_v61 = vsel %vm3281_vm4, %v1645_v56, %v1651_v39  ;;  %v2094_v62 = vld [vmem:[#allocation2 + $0x38] ss:$12 sps:$4 sm:$0xff]   ;;  %vm3297_vm4 = vmmov %vm3296_vm2 }
 0x13f   : > { %v1649_v26 = vsel %vm3282_vm0, %v1644_v60, %v1648_v58  ;;  %1653 = vst [vmem:[#allocation2 + $0x50] sm:$0x2] %v1652_v61  ;;  %v2095_v0 = vld [vmem:[#allocation2 + $0x34] ss:$12 sps:$4 sm:$0xff]   ;;  %v2097_v32 = vld [vmem:[#allocation2 + $0x30] ss:$12 sps:$4 sm:$0xff]   ;;  %1969 = vmatpush3.bf16.msra.mxu1 %v2094_v62  ;;  %vm3298_vm0 = vmmov %vm3296_vm2 }
 0x140   : > { %1650 = vst [vmem:[#allocation2 + $0x48] sm:$0x22] %v1649_v26  ;;  %1749 = vmatprep.subr.bf16.mxu0 %v2095_v0  ;;  %1970 = vmatprep.subr.bf16.mxu1 %v2216_v63 }
 0x141   : > { %1750 = vmatpush1.bf16.msra.mxu0 %v2097_v32 }
 0x142   : > { %v2099_v3 = vld [vmem:[#allocation2 + $0x50] ss:$0 sps:$4 sm:$0x33]  }
 0x143   : > { %v1743_v2 = vsel %vm3296_vm2, %v2099_v3, 0 }
 0x144   : > { %1971 = vmatpush3.bf16.msra.mxu1 %v1743_v2 }
 0x147   : > { %v1667_v7 = vld [vmem:[#allocation2 + $0x48] sm:$0x33]  ;;  %1973 = vmatmul.mubr.msk.bf16.vlgmr.msra.gmra.mrb[0].mxu1 %vm1731_vm3, %v1654_v1  ;;  %v1673_v63 = vpop.permute.xlu1 %1672 }
 0x148   : > { %v1950_v5 = vcombine.high %v1667_v7, %v1667_v7  ;;  %v1949_v57 = vcombine.low %v1667_v7, %v1667_v7 }
 0x14a   : > { %1952 = vmatprep.subr.msk.bf16.mxu0 %vm3297_vm4, %v1950_v5  ;;  %v1737_v30 = vsel %vm3298_vm0, %v1949_v57, 0 }
 0x14b   : > { %1752 = vmatpush1.bf16.msra.mxu0 %v1737_v30 }
 0x14e   : > { %1953 = vmatmul.mubr.msk.bf16.vlgmr.msra.gmra.mrb[0].mxu0 %vm1731_vm3, %v1654_v1 }
 0x21a   : > { %v1820_v11 = vpop.f32.mrb[0].mxu1 }
 0x21b   : > { %v1821_v4 = vadd.f32 %v1820_v11, %v1673_v63  ;;  %v1974_v59 = vpop.f32.mrb[1].mxu1 }
 0x21c   : > { %v1823_v6 = vpop.f32.mrb[2].mxu1 }
 0x21d   : > { %1828 = vst [vmem:[%s186_s28 + $0x10] sm:$0xff] %v1821_v4  ;;  %v1975_v8 = vpop.f32.mrb[3].mxu1 }
 0x221   : > { %v1779_v29 = vpop.f32.mrb[0].mxu0 }
 0x222   : > { %v1780_v10 = vadd.f32 %v1779_v29, %v1673_v63  ;;  %v1781_v21 = vpop.f32.mrb[1].mxu0 }
 0x223   : > { %v1782_v9 = vadd.f32 %v1781_v21, %v1673_v63  ;;  %v1783_v16 = vpop.f32.mrb[2].mxu0 }
 0x224   : > { %1826 = vst [vmem:[%s186_s28] sm:$0xff] %v1780_v10  ;;  %v1784_v19 = vpop.f32.mrb[3].mxu0 }
 0x225   : > { %1827 = vst [vmem:[%s186_s28 + $0x8] sm:$0xff] %v1782_v9 }
 0x226   : > { %2144 = shalt.err (!%p2141_p4)
}
 0x227   : > { %s2145_s29 = scalar_lea.hbm %s3041_s11, 384  ;;  %s2149_s7 = scalar_lea.hbm %s3088_s3, 768 }
 0x228   : > { %p2146_p5 = scmp.ne.s32.totalorder %s3041_s11, %s2145_s29  ;;  %p2150_p0 = scmp.lt.u32.totalorder %s3041_s11, %s3088_s3 }
 0x229   : > { %p2151_p1 = scmp.lt.u32.totalorder %s2149_s7, %s2145_s29  ;;  %p2153_p6 = scmp.lt.u32.totalorder %s2145_s29, %s3041_s11 }
 0x22a   : > { %p2147_p8 = pnand %p2146_p5, %p3299_p11 }
 0x22b   : > { %p2152_p3 = por %p2151_p1, %p2150_p0 }
 0x22c   : > { %p2148_p9 = pneg %p2147_p8 }
 0x22d   : > { %p2154_p12 = por %p2153_p6, %p2152_p3 }
 0x22f   : > { %p2155_p13 = pnand %p2154_p12, %p2148_p9 }
 0x231   : > { %2158 = shalt.err (!%p2155_p13)
}
 0x232   : > { %1980 = dma.vmem_to_hbm [thread:$0]  (%p3299_p11), %s3043_s30, 384, %s3041_s11, %s1830_s16  }
 0x233 PF: > { %s1856_s22 = sand.u32 1, %s2185_s12   ;;  %p3300_p7 = scmp.ne.s32.totalorder %s3131_s25, 0 }
 0x234   : > { %p3301_p10 = scmp.ge.s32.totalorder %s2197_s15, 2  ;;  %s1857_s26 = scalar_lea.sflag [#allocation5], %s1856_s22 }
 0x236   : > { %p1987_p2 = pnand %p3301_p10, %p3300_p7 }
 0x238   : > { %2180 = dma.done.wait (!%p1987_p2), %s1857_s26, 384  }
 0x239   : > { %2182 = vsyncadd (!%p1987_p2), %s1857_s26, 4294966912  ;;  %p16_p4 = scmp.ge.s32.totalorder %s2274_s18, 4   ;;  %s3302_s12 = smov %s2189_s13 }
 0x23a   : > { %s3303_s13 = smov %s2193_s14  ;;  %s3304_s14 = smov %s2286_s21 }
 0x23b   : > { %s3305_s15 = smov %s2274_s18  ;;  %18 = sbr.rel (!%p16_p4) target bundleno = 5 (0x5), region = 77 }
 0x242   :  { %1862 = vsyncpa [#allocation4], 1 }
 0x243   :  { %1864 = vsyncpa [#allocation4 + $0x1], 1 }
 0x244   :  { %1865 = vsyncpa [#allocation5], 1 }
 0x245   :  { %1867 = vsyncpa [#allocation5 + $0x1], 1 }

</bundles_post_ra>
